<compile_context>
chip_gen: v6e
topology: v6e:2x2x1
jax: 0.10.0
libtpu: 0.0.40
codegen_flags: <defaults>
</compile_context>

<pallas_src>
import numpy as np

import jax
import jax.numpy as jnp
from jax import lax
from jax.experimental import pallas as pl
from jax.experimental.pallas import tpu as pltpu

KSIZE = 3  # kernel_size=3, stride=1, padding=1


def _conv_relu_kernel(x_ref, w_ref, b_ref, o_ref, xp_ref):
    """One batch element per grid step.

    x_ref : (1, H, W, Cin)   un-padded input tile (VMEM)
    w_ref : (9, Cin, Cpad)   packed conv weights (VMEM, resident, 1-buffered)
    b_ref : (1, Cpad)        bias, zero lane-padded, f32 (VMEM, resident)
    o_ref : (1, H, W, Cpad)  lane-dense output tile (VMEM)
    xp_ref: (H+2, W+2, Cin)  scratch: zero-bordered input (compute dtype)
    """
    _, H, W, Cpad = o_ref.shape
    Cin = x_ref.shape[-1]
    cdt = xp_ref.dtype

    # Zero ONLY the 1-pixel border strips; the interior is fully overwritten
    # below.  Re-done every iteration (scratch persists per core; a one-time
    # pl.when(b == 0) init would leave the other TensorCore uninitialized
    # under megacore sharding).
    xp_ref[0:1, :, :] = jnp.zeros((1, W + 2, Cin), cdt)
    xp_ref[H + 1:H + 2, :, :] = jnp.zeros((1, W + 2, Cin), cdt)
    xp_ref[:, 0:1, :] = jnp.zeros((H + 2, 1, Cin), cdt)
    xp_ref[:, W + 1:W + 2, :] = jnp.zeros((H + 2, 1, Cin), cdt)
    xp_ref[1:H + 1, 1:W + 1, :] = x_ref[0].astype(cdt)

    # 9 accumulating MXU matmuls over shifted ref slices (no materialized
    # im2col).  Per tap: K = Cin, N = Cpad (lane-dense), f32 accumulation.
    acc = jnp.zeros((H * W, Cpad), jnp.float32)
    for ky in range(KSIZE):
        for kx in range(KSIZE):
            t = ky * KSIZE + kx
            patch = xp_ref[ky:ky + H, kx:kx + W, :].reshape(H * W, Cin)
            acc += jnp.dot(patch, w_ref[t],
                           preferred_element_type=jnp.float32)

    # Fused bias + ReLU (padded lanes: ReLU(0 + 0) = 0), lane-dense store.
    acc = jnp.maximum(acc + b_ref[...], 0.0)
    o_ref[...] = acc.reshape(1, H, W, Cpad).astype(o_ref.dtype)


def conv_forward(x_nchw, weight, bias, *, compute_dtype=jnp.float32):
    """x_nchw: (B, Cin, H, W); weight: (Cout, Cin, 3, 3); bias: (Cout,).

    compute_dtype: dtype of the matmul operands (input patches + weights).
    float32 gives bit-faithful results for verification; jnp.bfloat16 is the
    production choice on v6e/v7x (f32 accumulation is kept either way).
    """
    B, Cin, H, W = x_nchw.shape
    Cout = weight.shape[0]
    Cpad = pl.cdiv(Cout, 128) * 128          # lane-dense output channels
    out_dtype = x_nchw.dtype

    # Channels-last so channels sit on the 128-lane axis inside the kernel.
    x_nhwc = jnp.transpose(x_nchw, (0, 2, 3, 1)).astype(compute_dtype)

    # Pack weights once: (Cout,Cin,3,3) -> (3,3,Cin,Cout) -> (9, Cin, Cpad).
    # Each tap is then a tile-aligned first-axis index in the kernel.
    w2 = jnp.transpose(weight, (2, 3, 1, 0)).reshape(KSIZE * KSIZE, Cin, Cout)
    w2 = jnp.pad(w2, ((0, 0), (0, 0), (0, Cpad - Cout))).astype(compute_dtype)
    # Zero-padded bias lanes -> ReLU(0 + 0) = 0 in the padded channels.
    b2 = jnp.pad(bias.reshape(1, Cout).astype(jnp.float32),
                 ((0, 0), (0, Cpad - Cout)))

    # VMEM budget: double-buffered x/out blocks + single-buffered w/b + scratch.
    c_bytes = np.dtype(compute_dtype).itemsize
    o_bytes = np.dtype(out_dtype).itemsize
    x_blk = H * W * Cin * c_bytes
    o_blk = H * W * Cpad * o_bytes
    w_blk = KSIZE * KSIZE * Cin * Cpad * c_bytes
    b_blk = Cpad * 4
    xp_blk = (H + 2) * (W + 2) * Cin * c_bytes
    vmem_need = 2 * (x_blk + o_blk) + w_blk + b_blk + xp_blk
    vmem_limit = int(min(max(2 * vmem_need, 8 << 20), 64 << 20))

    cost = pl.CostEstimate(
        flops=2 * B * H * W * KSIZE * KSIZE * Cin * Cout,
        transcendentals=0,
        bytes_accessed=(B * H * W * Cin * c_bytes + w_blk + b_blk
                        + B * H * W * Cpad * o_bytes),
    )

    out_nhwc = pl.pallas_call(
        _conv_relu_kernel,
        out_shape=jax.ShapeDtypeStruct((B, H, W, Cpad), out_dtype),
        grid_spec=pltpu.PrefetchScalarGridSpec(
            num_scalar_prefetch=0,
            grid=(B,),
            in_specs=[
                pl.BlockSpec((1, H, W, Cin), lambda b: (b, 0, 0, 0)),
                pl.BlockSpec((KSIZE * KSIZE, Cin, Cpad), lambda b: (0, 0, 0),
                             pipeline_mode=pl.Buffered(1)),
                pl.BlockSpec((1, Cpad), lambda b: (0, 0),
                             pipeline_mode=pl.Buffered(1)),
            ],
            out_specs=pl.BlockSpec((1, H, W, Cpad), lambda b: (b, 0, 0, 0)),
            scratch_shapes=[
                pltpu.VMEM((H + 2, W + 2, Cin), compute_dtype),
            ],
        ),
        compiler_params=pltpu.CompilerParams(
            dimension_semantics=("parallel",),
            vmem_limit_bytes=vmem_limit),
        cost_estimate=cost,
    )(x_nhwc, w2, b2)

    # Drop the lane padding and restore NCHW to match torch semantics.
    return jnp.transpose(out_nhwc[..., :Cout], (0, 3, 1, 2))


def _reference(x_nchw, weight, bias):
    y = lax.conv_general_dilated(
        x_nchw, weight, window_strides=(1, 1), padding="SAME",
        dimension_numbers=("NCHW", "OIHW", "NCHW"))
    y = y + bias.reshape(1, -1, 1, 1)
    return jnp.maximum(y, 0.0)


if __name__ == "__main__":
    key = jax.random.PRNGKey(0)
    k_x, k_w, k_b = jax.random.split(key, 3)

    B, Cin, H, W = 2, 4, 16, 16
    Cout = 8

    x = jax.random.normal(k_x, (B, Cin, H, W), dtype=jnp.float32)
    # Deterministic synthetic params (shapes as in nn.Conv2d(inp_dim, out_dim, 3)).
    fan_in = Cin * KSIZE * KSIZE
    bound = 1.0 / (fan_in ** 0.5)
    weight = jax.random.uniform(k_w, (Cout, Cin, KSIZE, KSIZE),
                                minval=-bound, maxval=bound, dtype=jnp.float32)
    bias = jax.random.uniform(k_b, (Cout,), minval=-bound, maxval=bound,
                              dtype=jnp.float32)

    out = conv_forward(x, weight, bias)
    out = jax.block_until_ready(out)

    ref = _reference(x, weight, bias)
    assert out.shape == (B, Cout, H, W)
    assert jnp.allclose(out, ref, atol=1e-5, rtol=1e-5), "mismatch vs reference conv"

    print("KERNEL_OK")
</pallas_src>

<mosaic_0001>
module attributes {stable_mosaic.version = 11 : i64} {
  func.func @_conv_relu_kernel(%arg0: i32, %arg1: memref<1x16x16x4xf32, #tpu.memory_space<vmem>>, %arg2: memref<9x4x128xf32, #tpu.memory_space<vmem>>, %arg3: memref<1x128xf32, #tpu.memory_space<vmem>>, %arg4: memref<1x16x16x128xf32, #tpu.memory_space<vmem>>, %arg5: memref<18x18x4xf32, #tpu.memory_space<vmem>>) attributes {dimension_semantics = [#tpu.dimension_semantics<parallel>], iteration_bounds = array<i64: 2>, scalar_prefetch = 0 : i64, scratch_operands = 1 : i64, tpu.core_type = #tpu.core_type<tc>, window_params = [{transform_indices = @transform_0, window_bounds = array<i64: 1, 16, 16, 4>}, {pipeline_mode = #tpu.pipeline_mode<synchronous>, transform_indices = @transform_1, window_bounds = array<i64: 9, 4, 128>}, {pipeline_mode = #tpu.pipeline_mode<synchronous>, transform_indices = @transform_2, window_bounds = array<i64: 1, 128>}, {transform_indices = @transform_3, window_bounds = array<i64: 1, 16, 16, 128>}]} {
    %cst = arith.constant 0.000000e+00 : f32
    %0 = vector.broadcast %cst : f32 to vector<1x18x4xf32>
    %c0 = arith.constant 0 : index
    %c0_0 = arith.constant 0 : index
    %c0_1 = arith.constant 0 : index
    %1 = vector.load %arg5[%c0, %c0_0, %c0_1] : memref<18x18x4xf32, #tpu.memory_space<vmem>>, vector<1x18x4xf32>
    tpu.vector_store %arg5[%c0, %c0_0, %c0_1], %0 {strides = array<i32>} : memref<18x18x4xf32, #tpu.memory_space<vmem>>, vector<1x18x4xf32>,
    %cst_2 = arith.constant 0.000000e+00 : f32
    %2 = vector.broadcast %cst_2 : f32 to vector<1x18x4xf32>
    %c17 = arith.constant 17 : index
    %c0_3 = arith.constant 0 : index
    %c0_4 = arith.constant 0 : index
    %3 = vector.load %arg5[%c17, %c0_3, %c0_4] : memref<18x18x4xf32, #tpu.memory_space<vmem>>, vector<1x18x4xf32>
    tpu.vector_store %arg5[%c17, %c0_3, %c0_4], %2 {strides = array<i32>} : memref<18x18x4xf32, #tpu.memory_space<vmem>>, vector<1x18x4xf32>,
    %cst_5 = arith.constant 0.000000e+00 : f32
    %4 = vector.broadcast %cst_5 : f32 to vector<18x1x4xf32>
    %c0_6 = arith.constant 0 : index
    %c0_7 = arith.constant 0 : index
    %c0_8 = arith.constant 0 : index
    %5 = vector.load %arg5[%c0_6, %c0_7, %c0_8] : memref<18x18x4xf32, #tpu.memory_space<vmem>>, vector<18x1x4xf32>
    tpu.vector_store %arg5[%c0_6, %c0_7, %c0_8], %4 {strides = array<i32>} : memref<18x18x4xf32, #tpu.memory_space<vmem>>, vector<18x1x4xf32>,
    %cst_9 = arith.constant 0.000000e+00 : f32
    %6 = vector.broadcast %cst_9 : f32 to vector<18x1x4xf32>
    %c0_10 = arith.constant 0 : index
    %c17_11 = arith.constant 17 : index
    %c0_12 = arith.constant 0 : index
    %7 = vector.load %arg5[%c0_10, %c17_11, %c0_12] : memref<18x18x4xf32, #tpu.memory_space<vmem>>, vector<18x1x4xf32>
    tpu.vector_store %arg5[%c0_10, %c17_11, %c0_12], %6 {strides = array<i32>} : memref<18x18x4xf32, #tpu.memory_space<vmem>>, vector<18x1x4xf32>,
    %c0_13 = arith.constant 0 : index
    %c0_14 = arith.constant 0 : index
    %c0_15 = arith.constant 0 : index
    %c0_16 = arith.constant 0 : index
    %8 = vector.load %arg1[%c0_13, %c0_14, %c0_15, %c0_16] : memref<1x16x16x4xf32, #tpu.memory_space<vmem>>, vector<1x16x16x4xf32>
    %9 = vector.shape_cast %8 : vector<1x16x16x4xf32> to vector<16x16x4xf32>
    %c1 = arith.constant 1 : index
    %c1_17 = arith.constant 1 : index
    %c0_18 = arith.constant 0 : index
    %10 = vector.load %arg5[%c1, %c1_17, %c0_18] : memref<18x18x4xf32, #tpu.memory_space<vmem>>, vector<16x16x4xf32>
    tpu.vector_store %arg5[%c1, %c1_17, %c0_18], %9 {strides = array<i32>} : memref<18x18x4xf32, #tpu.memory_space<vmem>>, vector<16x16x4xf32>,
    %cst_19 = arith.constant 0.000000e+00 : f32
    %11 = vector.broadcast %cst_19 : f32 to vector<256x128xf32>
    %c0_20 = arith.constant 0 : index
    %c0_21 = arith.constant 0 : index
    %c0_22 = arith.constant 0 : index
    %12 = vector.load %arg5[%c0_20, %c0_21, %c0_22] : memref<18x18x4xf32, #tpu.memory_space<vmem>>, vector<16x16x4xf32>
    %13 = vector.shape_cast %12 : vector<16x16x4xf32> to vector<256x4xf32>
    %c0_23 = arith.constant 0 : index
    %c0_24 = arith.constant 0 : index
    %c0_25 = arith.constant 0 : index
    %14 = vector.load %arg2[%c0_23, %c0_24, %c0_25] : memref<9x4x128xf32, #tpu.memory_space<vmem>>, vector<1x4x128xf32>
    %15 = vector.shape_cast %14 : vector<1x4x128xf32> to vector<4x128xf32>
    %cst_26 = arith.constant dense<0.000000e+00> : vector<256x128xf32>
    %16 = tpu.matmul %13, %15, %cst_26 {dimension_numbers = #tpu.dot_dimension_numbers<[1], [0], [0], [1], [0, 0, 1, 1], [], []>} : vector<256x4xf32>, vector<4x128xf32>, vector<256x128xf32> -> vector<256x128xf32>
    %17 = arith.addf %11, %16 : vector<256x128xf32>
    %c0_27 = arith.constant 0 : index
    %c1_28 = arith.constant 1 : index
    %c0_29 = arith.constant 0 : index
    %18 = vector.load %arg5[%c0_27, %c1_28, %c0_29] : memref<18x18x4xf32, #tpu.memory_space<vmem>>, vector<16x16x4xf32>
    %19 = vector.shape_cast %18 : vector<16x16x4xf32> to vector<256x4xf32>
    %c1_30 = arith.constant 1 : index
    %c0_31 = arith.constant 0 : index
    %c0_32 = arith.constant 0 : index
    %20 = vector.load %arg2[%c1_30, %c0_31, %c0_32] : memref<9x4x128xf32, #tpu.memory_space<vmem>>, vector<1x4x128xf32>
    %21 = vector.shape_cast %20 : vector<1x4x128xf32> to vector<4x128xf32>
    %cst_33 = arith.constant dense<0.000000e+00> : vector<256x128xf32>
    %22 = tpu.matmul %19, %21, %cst_33 {dimension_numbers = #tpu.dot_dimension_numbers<[1], [0], [0], [1], [0, 0, 1, 1], [], []>} : vector<256x4xf32>, vector<4x128xf32>, vector<256x128xf32> -> vector<256x128xf32>
    %23 = arith.addf %17, %22 : vector<256x128xf32>
    %c0_34 = arith.constant 0 : index
    %c2 = arith.constant 2 : index
    %c0_35 = arith.constant 0 : index
    %24 = vector.load %arg5[%c0_34, %c2, %c0_35] : memref<18x18x4xf32, #tpu.memory_space<vmem>>, vector<16x16x4xf32>
    %25 = vector.shape_cast %24 : vector<16x16x4xf32> to vector<256x4xf32>
    %c2_36 = arith.constant 2 : index
    %c0_37 = arith.constant 0 : index
    %c0_38 = arith.constant 0 : index
    %26 = vector.load %arg2[%c2_36, %c0_37, %c0_38] : memref<9x4x128xf32, #tpu.memory_space<vmem>>, vector<1x4x128xf32>
    %27 = vector.shape_cast %26 : vector<1x4x128xf32> to vector<4x128xf32>
    %cst_39 = arith.constant dense<0.000000e+00> : vector<256x128xf32>
    %28 = tpu.matmul %25, %27, %cst_39 {dimension_numbers = #tpu.dot_dimension_numbers<[1], [0], [0], [1], [0, 0, 1, 1], [], []>} : vector<256x4xf32>, vector<4x128xf32>, vector<256x128xf32> -> vector<256x128xf32>
    %29 = arith.addf %23, %28 : vector<256x128xf32>
    %c1_40 = arith.constant 1 : index
    %c0_41 = arith.constant 0 : index
    %c0_42 = arith.constant 0 : index
    %30 = vector.load %arg5[%c1_40, %c0_41, %c0_42] : memref<18x18x4xf32, #tpu.memory_space<vmem>>, vector<16x16x4xf32>
    %31 = vector.shape_cast %30 : vector<16x16x4xf32> to vector<256x4xf32>
    %c3 = arith.constant 3 : index
    %c0_43 = arith.constant 0 : index
    %c0_44 = arith.constant 0 : index
    %32 = vector.load %arg2[%c3, %c0_43, %c0_44] : memref<9x4x128xf32, #tpu.memory_space<vmem>>, vector<1x4x128xf32>
    %33 = vector.shape_cast %32 : vector<1x4x128xf32> to vector<4x128xf32>
    %cst_45 = arith.constant dense<0.000000e+00> : vector<256x128xf32>
    %34 = tpu.matmul %31, %33, %cst_45 {dimension_numbers = #tpu.dot_dimension_numbers<[1], [0], [0], [1], [0, 0, 1, 1], [], []>} : vector<256x4xf32>, vector<4x128xf32>, vector<256x128xf32> -> vector<256x128xf32>
    %35 = arith.addf %29, %34 : vector<256x128xf32>
    %c1_46 = arith.constant 1 : index
    %c1_47 = arith.constant 1 : index
    %c0_48 = arith.constant 0 : index
    %36 = vector.load %arg5[%c1_46, %c1_47, %c0_48] : memref<18x18x4xf32, #tpu.memory_space<vmem>>, vector<16x16x4xf32>
    %37 = vector.shape_cast %36 : vector<16x16x4xf32> to vector<256x4xf32>
    %c4 = arith.constant 4 : index
    %c0_49 = arith.constant 0 : index
    %c0_50 = arith.constant 0 : index
    %38 = vector.load %arg2[%c4, %c0_49, %c0_50] : memref<9x4x128xf32, #tpu.memory_space<vmem>>, vector<1x4x128xf32>
    %39 = vector.shape_cast %38 : vector<1x4x128xf32> to vector<4x128xf32>
    %cst_51 = arith.constant dense<0.000000e+00> : vector<256x128xf32>
    %40 = tpu.matmul %37, %39, %cst_51 {dimension_numbers = #tpu.dot_dimension_numbers<[1], [0], [0], [1], [0, 0, 1, 1], [], []>} : vector<256x4xf32>, vector<4x128xf32>, vector<256x128xf32> -> vector<256x128xf32>
    %41 = arith.addf %35, %40 : vector<256x128xf32>
    %c1_52 = arith.constant 1 : index
    %c2_53 = arith.constant 2 : index
    %c0_54 = arith.constant 0 : index
    %42 = vector.load %arg5[%c1_52, %c2_53, %c0_54] : memref<18x18x4xf32, #tpu.memory_space<vmem>>, vector<16x16x4xf32>
    %43 = vector.shape_cast %42 : vector<16x16x4xf32> to vector<256x4xf32>
    %c5 = arith.constant 5 : index
    %c0_55 = arith.constant 0 : index
    %c0_56 = arith.constant 0 : index
    %44 = vector.load %arg2[%c5, %c0_55, %c0_56] : memref<9x4x128xf32, #tpu.memory_space<vmem>>, vector<1x4x128xf32>
    %45 = vector.shape_cast %44 : vector<1x4x128xf32> to vector<4x128xf32>
    %cst_57 = arith.constant dense<0.000000e+00> : vector<256x128xf32>
    %46 = tpu.matmul %43, %45, %cst_57 {dimension_numbers = #tpu.dot_dimension_numbers<[1], [0], [0], [1], [0, 0, 1, 1], [], []>} : vector<256x4xf32>, vector<4x128xf32>, vector<256x128xf32> -> vector<256x128xf32>
    %47 = arith.addf %41, %46 : vector<256x128xf32>
    %c2_58 = arith.constant 2 : index
    %c0_59 = arith.constant 0 : index
    %c0_60 = arith.constant 0 : index
    %48 = vector.load %arg5[%c2_58, %c0_59, %c0_60] : memref<18x18x4xf32, #tpu.memory_space<vmem>>, vector<16x16x4xf32>
    %49 = vector.shape_cast %48 : vector<16x16x4xf32> to vector<256x4xf32>
    %c6 = arith.constant 6 : index
    %c0_61 = arith.constant 0 : index
    %c0_62 = arith.constant 0 : index
    %50 = vector.load %arg2[%c6, %c0_61, %c0_62] : memref<9x4x128xf32, #tpu.memory_space<vmem>>, vector<1x4x128xf32>
    %51 = vector.shape_cast %50 : vector<1x4x128xf32> to vector<4x128xf32>
    %cst_63 = arith.constant dense<0.000000e+00> : vector<256x128xf32>
    %52 = tpu.matmul %49, %51, %cst_63 {dimension_numbers = #tpu.dot_dimension_numbers<[1], [0], [0], [1], [0, 0, 1, 1], [], []>} : vector<256x4xf32>, vector<4x128xf32>, vector<256x128xf32> -> vector<256x128xf32>
    %53 = arith.addf %47, %52 : vector<256x128xf32>
    %c2_64 = arith.constant 2 : index
    %c1_65 = arith.constant 1 : index
    %c0_66 = arith.constant 0 : index
    %54 = vector.load %arg5[%c2_64, %c1_65, %c0_66] : memref<18x18x4xf32, #tpu.memory_space<vmem>>, vector<16x16x4xf32>
    %55 = vector.shape_cast %54 : vector<16x16x4xf32> to vector<256x4xf32>
    %c7 = arith.constant 7 : index
    %c0_67 = arith.constant 0 : index
    %c0_68 = arith.constant 0 : index
    %56 = vector.load %arg2[%c7, %c0_67, %c0_68] : memref<9x4x128xf32, #tpu.memory_space<vmem>>, vector<1x4x128xf32>
    %57 = vector.shape_cast %56 : vector<1x4x128xf32> to vector<4x128xf32>
    %cst_69 = arith.constant dense<0.000000e+00> : vector<256x128xf32>
    %58 = tpu.matmul %55, %57, %cst_69 {dimension_numbers = #tpu.dot_dimension_numbers<[1], [0], [0], [1], [0, 0, 1, 1], [], []>} : vector<256x4xf32>, vector<4x128xf32>, vector<256x128xf32> -> vector<256x128xf32>
    %59 = arith.addf %53, %58 : vector<256x128xf32>
    %c2_70 = arith.constant 2 : index
    %c2_71 = arith.constant 2 : index
    %c0_72 = arith.constant 0 : index
    %60 = vector.load %arg5[%c2_70, %c2_71, %c0_72] : memref<18x18x4xf32, #tpu.memory_space<vmem>>, vector<16x16x4xf32>
    %61 = vector.shape_cast %60 : vector<16x16x4xf32> to vector<256x4xf32>
    %c8 = arith.constant 8 : index
    %c0_73 = arith.constant 0 : index
    %c0_74 = arith.constant 0 : index
    %62 = vector.load %arg2[%c8, %c0_73, %c0_74] : memref<9x4x128xf32, #tpu.memory_space<vmem>>, vector<1x4x128xf32>
    %63 = vector.shape_cast %62 : vector<1x4x128xf32> to vector<4x128xf32>
    %cst_75 = arith.constant dense<0.000000e+00> : vector<256x128xf32>
    %64 = tpu.matmul %61, %63, %cst_75 {dimension_numbers = #tpu.dot_dimension_numbers<[1], [0], [0], [1], [0, 0, 1, 1], [], []>} : vector<256x4xf32>, vector<4x128xf32>, vector<256x128xf32> -> vector<256x128xf32>
    %65 = arith.addf %59, %64 : vector<256x128xf32>
    %c0_76 = arith.constant 0 : index
    %c0_77 = arith.constant 0 : index
    %66 = vector.load %arg3[%c0_76, %c0_77] : memref<1x128xf32, #tpu.memory_space<vmem>>, vector<1x128xf32>
    %67 = vector.broadcast %66 : vector<1x128xf32> to vector<256x128xf32>
    %68 = arith.addf %65, %67 : vector<256x128xf32>
    %cst_78 = arith.constant 0.000000e+00 : f32
    %69 = vector.broadcast %cst_78 : f32 to vector<256x128xf32>
    %70 = arith.maximumf %68, %69 : vector<256x128xf32>
    %71 = vector.shape_cast %70 : vector<256x128xf32> to vector<1x16x16x128xf32>
    %c0_79 = arith.constant 0 : index
    %c0_80 = arith.constant 0 : index
    %c0_81 = arith.constant 0 : index
    %c0_82 = arith.constant 0 : index
    %72 = vector.load %arg4[%c0_79, %c0_80, %c0_81, %c0_82] : memref<1x16x16x128xf32, #tpu.memory_space<vmem>>, vector<1x16x16x128xf32>
    tpu.vector_store %arg4[%c0_79, %c0_80, %c0_81, %c0_82], %71 {strides = array<i32>} : memref<1x16x16x128xf32, #tpu.memory_space<vmem>>, vector<1x16x16x128xf32>,
    return
  }
  func.func @transform_0(%arg0: i32) -> (i32, i32, i32, i32) {
    %c0_i32 = arith.constant 0 : i32
    %c0_i32_0 = arith.constant 0 : i32
    %c0_i32_1 = arith.constant 0 : i32
    %c0_i32_2 = arith.constant 0 : i32
    return %arg0, %c0_i32, %c0_i32_0, %c0_i32_1 : i32, i32, i32, i32
  }
  func.func @transform_1(%arg0: i32) -> (i32, i32, i32) {
    %c0_i32 = arith.constant 0 : i32
    %c0_i32_0 = arith.constant 0 : i32
    %c0_i32_1 = arith.constant 0 : i32
    %c0_i32_2 = arith.constant 0 : i32
    return %c0_i32, %c0_i32_0, %c0_i32_1 : i32, i32, i32
  }
  func.func @transform_2(%arg0: i32) -> (i32, i32) {
    %c0_i32 = arith.constant 0 : i32
    %c0_i32_0 = arith.constant 0 : i32
    %c0_i32_1 = arith.constant 0 : i32
    return %c0_i32, %c0_i32_0 : i32, i32
  }
  func.func @transform_3(%arg0: i32) -> (i32, i32, i32, i32) {
    %c0_i32 = arith.constant 0 : i32
    %c0_i32_0 = arith.constant 0 : i32
    %c0_i32_1 = arith.constant 0 : i32
    %c0_i32_2 = arith.constant 0 : i32
    return %arg0, %c0_i32, %c0_i32_0, %c0_i32_1 : i32, i32, i32, i32
  }
}

</mosaic_0001>

<bundles_post_ra>
// kernel: tpu_custom_call.1
= control target key start
LH: loop header
LB: loop body
LE: loop exit
PB: predicated region body
PF: predicated region fallthrough
CT: control target
= control target key end

     0   :  { %8 = vsyncpa [#allocation4], 0  ;;  %s6670_s0 = inlined_call_operand.vmem [shape: f32[2,16,16,4], index: 0, kind: input, shape index: {}]   ;;  %s6671_s1 = inlined_call_operand.vmem [shape: f32[9,4,128], index: 1, kind: input, shape index: {}]   ;;  %s6672_s2 = inlined_call_operand.vmem [shape: f32[1,128], index: 2, kind: input, shape index: {}]   ;;  %s6673_s3 = inlined_call_operand.hbm [shape: f32[2,16,16,128], index: 3, kind: output, shape index: {}]  }
   0x1   :  { %10 = vsyncpa [#allocation4 + $0x1], 0  ;;  %s5103_s12 = smov 0   ;;  %s5105_s13 = smov 0  }
   0x2   :  { %s5107_s14 = smov 0   ;;  %s5109_s15 = smov 0  }
   0x3 LB: > { %s5124_s16 = sadd.s32 4294967295, %s5077_s15   ;;  %s3906_s17 = sadd.s32 4294967294, %s5077_s15   ;;  %s5077_s15 = sphi %s5109_s15, %s6895_s15   ;;  %s5073_s14 = sphi %s5107_s14, %s6894_s14   ;;  %s5069_s13 = sphi %s5105_s13, %s6893_s13   ;;  %s5065_s12 = sphi %s5103_s12, %s6892_s12  }
   0x4   : > { %s5128_s18 = sadd.s32 1, %s5077_s15   ;;  %s91_s19 = sadd.s32 1, %s5073_s14 }
   0x5   : > { %s88_s20 = ssub.s32 %s5077_s15, %s5128_s18  ;;  %p101_p0 = scmp.ne.s32.totalorder %s5073_s14, %s5069_s13 }
   0x6   : > { %p89_p1 = scmp.eq.s32.totalorder %s88_s20, 0  ;;  %p102_p2 = scmp.eq.s32.totalorder %s5124_s16, 1 }
   0x7   : > { %p107_p3 = scmp.ne.s32.totalorder %s5069_s13, %s5065_s12  ;;  %p108_p4 = scmp.eq.s32.totalorder %s3906_s17, 1 }
   0x8   : > { %s5139_s21 = scalar_select %p89_p1, %s5073_s14, %s91_s19  }
   0x9   : > { %p5141_p5 = por %p102_p2, %p101_p0  ;;  %p5145_p6 = por %p108_p4, %p107_p3 }
   0xa   : > { %p3909_p7 = scmp.ge.s32.totalorder %s5077_s15, 1  ;;  %p140_p8 = scmp.lt.s32.totalorder %s5077_s15, 3 }
   0xc   : > { %p141_p9 = pnand %p3909_p7, %p140_p8 }
   0xe   : > { %144 = sbr.rel (%p141_p9) target bundleno = 551 (0x227), region = 32 }
  0x13   : > { %v3913_v0 = vld [vmem:[%s6671_s1 + $0x4] sm:$0xf]  ;;  %vm443_vm0 = vcmask 1043456   ;;  %vm169_vm1 = vcmask 31744   ;;  %p164_p10 = scmp.lt.s32.totalorder %s5124_s16, 1  ;;  %v5079_v1 = vmov 0.0  }
  0x14   : > { %4973 = vmatprep.subr.msk.mxu1 %vm443_vm0, %v3913_v0  ;;  %4523 = vmatprep.subr.msk.mxu0 %vm443_vm0, %v3913_v0  ;;  %170 = vst.msk [vmem:[#allocation2] sm:$0xff] %vm169_vm1, %v5079_v1  ;;  %171 = vst.msk [vmem:[#allocation2 + $0x8] sm:$0xff] %vm169_vm1, %v5079_v1  ;;  %v5164_v2 = vld [vmem:[%s6671_s1] sm:$0xf]  ;;  %vm172_vm2 = vcmask 25600   ;;  %vm178_vm3 = vcmask 24576  }
  0x15   : > { %175 = vst.msk [vmem:[#allocation2 + $0x198] sm:$0xff] %vm169_vm1, %v5079_v1  ;;  %176 = vst.msk [vmem:[#allocation2 + $0x1a0] sm:$0xff] %vm169_vm1, %v5079_v1  ;;  %v5169_v3 = vld [vmem:[%s6671_s1 + $0x8] sm:$0xf]  ;;  %4974 = vmatpush3.msk.msra.mxu1 %vm443_vm0, %v3913_v0  ;;  %4524 = vmatpush3.msk.msra.mxu0 %vm443_vm0, %v3913_v0  ;;  %s5176_s30 = scalar_select %p164_p10, %s5124_s16, 1 }
  0x16   : > { %173 = vst.msk [vmem:[#allocation2 + $0x10] sm:$0x3] %vm172_vm2, %v5079_v1  ;;  %177 = vst.msk [vmem:[#allocation2 + $0x1a8] sm:$0x3] %vm172_vm2, %v5079_v1  ;;  %4573 = vmatprep.subr.msk.mxu1 %vm443_vm0, %v5164_v2  ;;  %4623 = vmatprep.subr.msk.mxu0 %vm443_vm0, %v5169_v3  ;;  %v5236_v10 = vld [vmem:[%s6671_s1 + $0x10] sm:$0xf] }
  0x17   : > { %179 = vst.msk [vmem:[#allocation2] sm:$0x1] %vm178_vm3, %v5079_v1  ;;  %180 = vst.msk [vmem:[#allocation2 + $0x18] sm:$0x1] %vm178_vm3, %v5079_v1  ;;  %s4224_s4 = sshll.u32 %s5176_s30, 8  ;;  %s161_s29 = sand.u32 1, %s5069_s13  }
  0x18   : > { %181 = vst.msk [vmem:[#allocation2 + $0x30] sm:$0x1] %vm178_vm3, %v5079_v1  ;;  %182 = vst.msk [vmem:[#allocation2 + $0x48] sm:$0x1] %vm178_vm3, %v5079_v1  ;;  %s5222_s7 = scalar_lea.vmem %s6670_s0, %s4224_s4  ;;  %v5296_v34 = vld [vmem:[%s6671_s1 + $0xc] sm:$0xf] }
  0x19   : > { %183 = vst.msk [vmem:[#allocation2 + $0x60] sm:$0x1] %vm178_vm3, %v5079_v1  ;;  %184 = vst.msk [vmem:[#allocation2 + $0x78] sm:$0x1] %vm178_vm3, %v5079_v1  ;;  %v229_v4 = vld [vmem:[%s5222_s7 + $0x70] sm:$0xff]  ;;  %v230_v5 = vld [vmem:[%s5222_s7 + $0x78] sm:$0xff] }
  0x1a   : > { %185 = vst.msk [vmem:[#allocation2 + $0x90] sm:$0x1] %vm178_vm3, %v5079_v1  ;;  %186 = vst.msk [vmem:[#allocation2 + $0xa8] sm:$0x1] %vm178_vm3, %v5079_v1  ;;  %v215_v6 = vld [vmem:[%s5222_s7] sm:$0xff]  ;;  %v216_v8 = vld [vmem:[%s5222_s7 + $0x8] sm:$0xff] }
  0x1b   : > { %187 = vst.msk [vmem:[#allocation2 + $0xc0] sm:$0x1] %vm178_vm3, %v5079_v1  ;;  %188 = vst.msk [vmem:[#allocation2 + $0xd8] sm:$0x1] %vm178_vm3, %v5079_v1  ;;  %v231_v7 = vld [vmem:[%s5222_s7 + $0x80] sm:$0xff]  ;;  %v232_v9 = vld [vmem:[%s5222_s7 + $0x88] sm:$0xff] }
  0x1c   : > { %189 = vst.msk [vmem:[#allocation2 + $0xf0] sm:$0x1] %vm178_vm3, %v5079_v1  ;;  %190 = vst.msk [vmem:[#allocation2 + $0x108] sm:$0x1] %vm178_vm3, %v5079_v1  ;;  %v313_v11 = vld [vmem:[#allocation2 + $0x1] sm:$0xff]  ;;  %v217_v12 = vld [vmem:[%s5222_s7 + $0x10] sm:$0xff] }
  0x1d   : > { %191 = vst.msk [vmem:[#allocation2 + $0x120] sm:$0x1] %vm178_vm3, %v5079_v1  ;;  %192 = vst.msk [vmem:[#allocation2 + $0x138] sm:$0x1] %vm178_vm3, %v5079_v1  ;;  %v233_v13 = vld [vmem:[%s5222_s7 + $0x90] sm:$0xff]  ;;  %4525 = vmatprep.mubr.msk.f32.mxu0 %vm169_vm1, %v313_v11  ;;  %v218_v15 = vld [vmem:[%s5222_s7 + $0x18] sm:$0xff] }
  0x1e   : > { %193 = vst.msk [vmem:[#allocation2 + $0x150] sm:$0x1] %vm178_vm3, %v5079_v1  ;;  %194 = vst.msk [vmem:[#allocation2 + $0x168] sm:$0x1] %vm178_vm3, %v5079_v1  ;;  %v314_v14 = vld [vmem:[#allocation2 + $0x9] sm:$0xff]  ;;  %v234_v16 = vld [vmem:[%s5222_s7 + $0x98] sm:$0xff] }
  0x1f   : > { %195 = vst.msk [vmem:[#allocation2 + $0x180] sm:$0x1] %vm178_vm3, %v5079_v1  ;;  %196 = vst.msk [vmem:[#allocation2 + $0x198] sm:$0x1] %vm178_vm3, %v5079_v1  ;;  %4526 = vmatmul.mubr.msk.f32.vlgmr.msra.gmra.mxu0 %vm169_vm1, %v314_v14  ;;  %v219_v17 = vld [vmem:[%s5222_s7 + $0x20] sm:$0xff]  ;;  %v220_v19 = vld [vmem:[%s5222_s7 + $0x28] sm:$0xff] }
  0x20   : > { %198 = vst.msk [vmem:[#allocation2 + $0x29] sm:$0x1] %vm178_vm3, %v5079_v1  ;;  %199 = vst.msk [vmem:[#allocation2 + $0x41] sm:$0x1] %vm178_vm3, %v5079_v1  ;;  %v235_v18 = vld [vmem:[%s5222_s7 + $0xa0] sm:$0xff]  ;;  %4624 = vmatpush3.msk.msra.mxu0 %vm443_vm0, %v5169_v3  ;;  %v236_v20 = vld [vmem:[%s5222_s7 + $0xa8] sm:$0xff] }
  0x21   : > { %200 = vst.msk [vmem:[#allocation2 + $0x59] sm:$0x1] %vm178_vm3, %v5079_v1  ;;  %201 = vst.msk [vmem:[#allocation2 + $0x71] sm:$0x1] %vm178_vm3, %v5079_v1  ;;  %v221_v21 = vld [vmem:[%s5222_s7 + $0x30] sm:$0xff]  ;;  %v222_v23 = vld [vmem:[%s5222_s7 + $0x38] sm:$0xff]  ;;  %4723 = vmatprep.subr.msk.mxu0 %vm443_vm0, %v5236_v10 }
  0x22   : > { %202 = vst.msk [vmem:[#allocation2 + $0x89] sm:$0x1] %vm178_vm3, %v5079_v1  ;;  %203 = vst.msk [vmem:[#allocation2 + $0xa1] sm:$0x1] %vm178_vm3, %v5079_v1  ;;  %v237_v22 = vld [vmem:[%s5222_s7 + $0xb0] sm:$0xff]  ;;  %v238_v24 = vld [vmem:[%s5222_s7 + $0xb8] sm:$0xff] }
  0x23   : > { %204 = vst.msk [vmem:[#allocation2 + $0xb9] sm:$0x1] %vm178_vm3, %v5079_v1  ;;  %205 = vst.msk [vmem:[#allocation2 + $0xd1] sm:$0x1] %vm178_vm3, %v5079_v1  ;;  %v223_v25 = vld [vmem:[%s5222_s7 + $0x40] sm:$0xff]  ;;  %v224_v27 = vld [vmem:[%s5222_s7 + $0x48] sm:$0xff] }
  0x24   : > { %206 = vst.msk [vmem:[#allocation2 + $0xe9] sm:$0x1] %vm178_vm3, %v5079_v1  ;;  %207 = vst.msk [vmem:[#allocation2 + $0x101] sm:$0x1] %vm178_vm3, %v5079_v1  ;;  %v239_v26 = vld [vmem:[%s5222_s7 + $0xc0] sm:$0xff]  ;;  %v240_v28 = vld [vmem:[%s5222_s7 + $0xc8] sm:$0xff] }
  0x25   : > { %208 = vst.msk [vmem:[#allocation2 + $0x119] sm:$0x1] %vm178_vm3, %v5079_v1  ;;  %209 = vst.msk [vmem:[#allocation2 + $0x131] sm:$0x1] %vm178_vm3, %v5079_v1  ;;  %v225_v36 = vld [vmem:[%s5222_s7 + $0x50] sm:$0xff]  ;;  %v226_v46 = vld [vmem:[%s5222_s7 + $0x58] sm:$0xff] }
  0x26   : > { %210 = vst.msk [vmem:[#allocation2 + $0x149] sm:$0x1] %vm178_vm3, %v5079_v1  ;;  %211 = vst.msk [vmem:[#allocation2 + $0x161] sm:$0x1] %vm178_vm3, %v5079_v1  ;;  %v241_v39 = vld [vmem:[%s5222_s7 + $0xd0] sm:$0xff]  ;;  %v242_v47 = vld [vmem:[%s5222_s7 + $0xd8] sm:$0xff] }
  0x27   : > { %212 = vst.msk [vmem:[#allocation2 + $0x179] sm:$0x1] %vm178_vm3, %v5079_v1  ;;  %213 = vst.msk [vmem:[#allocation2 + $0x191] sm:$0x1] %vm178_vm3, %v5079_v1  ;;  %v227_v48 = vld [vmem:[%s5222_s7 + $0x60] sm:$0xff]  ;;  %v228_v50 = vld [vmem:[%s5222_s7 + $0x68] sm:$0xff] }
  0x28   : > { %197 = vst.msk [vmem:[#allocation2 + $0x11] sm:$0x1] %vm178_vm3, %v5079_v1  ;;  %214 = vst.msk [vmem:[#allocation2 + $0x1a9] sm:$0x1] %vm178_vm3, %v5079_v1  ;;  %v243_v49 = vld [vmem:[%s5222_s7 + $0xe0] sm:$0xff]  ;;  %v244_v51 = vld [vmem:[%s5222_s7 + $0xe8] sm:$0xff] }
  0x29   : > { %262 = vst.msk [vmem:[#allocation2 + $0xc1] sm:$0xff] %vm169_vm1, %v229_v4  ;;  %263 = vst.msk [vmem:[#allocation2 + $0xc9] sm:$0xff] %vm169_vm1, %v230_v5  ;;  %v996_v3 = vld [vmem:[#allocation2 + $0x2] sm:$0xff]  ;;  %v5449_v14 = vld [vmem:[%s6671_s1 + $0x14] sm:$0xf]  ;;  %s3910_s5 = sshll.u32 %s161_s29, 8 }
  0x2a   : > { %248 = vst.msk [vmem:[#allocation2 + $0x19] sm:$0xff] %vm169_vm1, %v215_v6  ;;  %264 = vst.msk [vmem:[#allocation2 + $0xd9] sm:$0xff] %vm169_vm1, %v231_v7  ;;  %v280_v6 = vld [vmem:[#allocation2] sm:$0xff]  ;;  %s6481_s6 = scalar_lea.vmem [#allocation3], %s3910_s5  ;;  %s5080_s19 = smov [#allocation3]  }
  0x2b   : > { %249 = vst.msk [vmem:[#allocation2 + $0x21] sm:$0xff] %vm169_vm1, %v216_v8  ;;  %265 = vst.msk [vmem:[#allocation2 + $0xe1] sm:$0xff] %vm169_vm1, %v232_v9  ;;  %v5428_v8 = vld [vmem:[%s6671_s1 + $0x18] sm:$0xf]  ;;  %v281_v9 = vld [vmem:[#allocation2 + $0x8] sm:$0xff]  ;;  %s3844_s8 = sshll.u32 %s6481_s6, 4  ;;  %s6624_s8 = int_to_ptr.vmem [resolvable:$true] %s3844_s8 }
  0x2c   : > { %250 = vst.msk [vmem:[#allocation2 + $0x31] sm:$0xff] %vm169_vm1, %v217_v12  ;;  %266 = vst.msk [vmem:[#allocation2 + $0xf1] sm:$0xff] %vm169_vm1, %v233_v13  ;;  %s5017_s17 = scalar_lea.vmem %s6624_s8, 4096  ;;  %s5021_s20 = sshll.u32 %s5080_s19, 4  ;;  %s5022_s20 = int_to_ptr.vmem [resolvable:$false] %s5021_s20 }
  0x2d   : > { %251 = vst.msk [vmem:[#allocation2 + $0x39] sm:$0xff] %vm169_vm1, %v218_v15  ;;  %267 = vst.msk [vmem:[#allocation2 + $0xf9] sm:$0xff] %vm169_vm1, %v234_v16  ;;  %v246_v15 = vld [vmem:[%s5222_s7 + $0xf8] sm:$0xff]  ;;  %p5018_p11 = scmp.ne.s32.totalorder %s6624_s8, %s5017_s17  ;;  %s5023_s24 = scalar_lea.vmem %s5022_s20, 8192 }
  0x2e   : > { %252 = vst.msk [vmem:[#allocation2 + $0x49] sm:$0xff] %vm169_vm1, %v219_v17  ;;  %268 = vst.msk [vmem:[#allocation2 + $0x109] sm:$0xff] %vm169_vm1, %v235_v18  ;;  %p5024_p0 = scmp.lt.s32.totalorder %s6624_s8, %s5022_s20  ;;  %p5025_p1 = scmp.lt.s32.totalorder %s5023_s24, %s5017_s17 }
  0x2f   : > { %253 = vst.msk [vmem:[#allocation2 + $0x51] sm:$0xff] %vm169_vm1, %v220_v19  ;;  %269 = vst.msk [vmem:[#allocation2 + $0x111] sm:$0xff] %vm169_vm1, %v236_v20  ;;  %v997_v5 = vld [vmem:[#allocation2 + $0xa] sm:$0xff]  ;;  %p5019_p12 = pnand %p5018_p11, %p5141_p5 }
  0x30   : > { %254 = vst.msk [vmem:[#allocation2 + $0x61] sm:$0xff] %vm169_vm1, %v221_v21  ;;  %270 = vst.msk [vmem:[#allocation2 + $0x121] sm:$0xff] %vm169_vm1, %v237_v22  ;;  %v5276_v29 = vld [vmem:[#allocation2 + $0xc1] sm:$0xff]  ;;  %v5278_v30 = vld [vmem:[#allocation2 + $0xc9] sm:$0xff]  ;;  %p5026_p2 = por %p5025_p1, %p5024_p0 }
  0x31   : > { %255 = vst.msk [vmem:[#allocation2 + $0x69] sm:$0xff] %vm169_vm1, %v222_v23  ;;  %271 = vst.msk [vmem:[#allocation2 + $0x129] sm:$0xff] %vm169_vm1, %v238_v24  ;;  %v5280_v31 = vld [vmem:[#allocation2 + $0x19] sm:$0xff]  ;;  %4549 = vmatprep.mubr.msk.f32.mxu1 %vm169_vm1, %v5276_v29  ;;  %p5020_p13 = pneg %p5019_p12 }
  0x32   : > { %256 = vst.msk [vmem:[#allocation2 + $0x79] sm:$0xff] %vm169_vm1, %v223_v25  ;;  %272 = vst.msk [vmem:[#allocation2 + $0x139] sm:$0xff] %vm169_vm1, %v239_v26  ;;  %4528 = vmatprep.mubr.msk.f32.mxu0 %vm169_vm1, %v5280_v31  ;;  %v5289_v32 = vld [vmem:[#allocation2 + $0xd9] sm:$0xff]  ;;  %v5291_v33 = vld [vmem:[#allocation2 + $0x21] sm:$0xff]  ;;  %4550 = vmatmul.mubr.msk.f32.vlgmr.msra.gmra.mxu1 %vm169_vm1, %v5278_v30 }
  0x33   : > { %257 = vst.msk [vmem:[#allocation2 + $0x81] sm:$0xff] %vm169_vm1, %v224_v27  ;;  %273 = vst.msk [vmem:[#allocation2 + $0x141] sm:$0xff] %vm169_vm1, %v240_v28  ;;  %4529 = vmatmul.mubr.msk.f32.gmra.mxu0 %vm169_vm1, %v5291_v33  ;;  %v5302_v35 = vld [vmem:[#allocation2 + $0x31] sm:$0xff]  ;;  %4574 = vmatpush3.msk.msra.mxu1 %vm443_vm0, %v5164_v2  ;;  %v5309_v37 = vld [vmem:[#allocation2 + $0xe1] sm:$0xff]  ;;  %p5027_p3 = pnand %p5026_p2, %p5020_p13 }
  0x34   : > { %4552 = vmatprep.mubr.msk.f32.mxu1 %vm169_vm1, %v5289_v32  ;;  %v5311_v38 = vld [vmem:[#allocation2 + $0x39] sm:$0xff]  ;;  %258 = vst.msk [vmem:[#allocation2 + $0x91] sm:$0xff] %vm169_vm1, %v225_v36  ;;  %4531 = vmatprep.mubr.msk.f32.mxu0 %vm169_vm1, %v5302_v35  ;;  %v5317_v40 = vld [vmem:[#allocation2 + $0xf1] sm:$0xff]  ;;  %274 = vst.msk [vmem:[#allocation2 + $0x151] sm:$0xff] %vm169_vm1, %v241_v39 }
  0x35   : > { %v5319_v41 = vld [vmem:[#allocation2 + $0x49] sm:$0xff]  ;;  %4673 = vmatprep.subr.msk.mxu1 %vm443_vm0, %v5296_v34  ;;  %v5328_v42 = vld [vmem:[#allocation2 + $0xf9] sm:$0xff]  ;;  %259 = vst.msk [vmem:[#allocation2 + $0x99] sm:$0xff] %vm169_vm1, %v226_v46  ;;  %275 = vst.msk [vmem:[#allocation2 + $0x159] sm:$0xff] %vm169_vm1, %v242_v47 }
  0x36   : > { %4553 = vmatmul.mubr.msk.f32.gmra.mxu1 %vm169_vm1, %v5309_v37  ;;  %v5334_v43 = vld [vmem:[#allocation2 + $0x109] sm:$0xff]  ;;  %v5336_v44 = vld [vmem:[#allocation2 + $0x51] sm:$0xff]  ;;  %260 = vst.msk [vmem:[#allocation2 + $0xa9] sm:$0xff] %vm169_vm1, %v227_v48  ;;  %276 = vst.msk [vmem:[#allocation2 + $0x169] sm:$0xff] %vm169_vm1, %v243_v49 }
  0x37   : > { %4532 = vmatmul.mubr.msk.f32.gmra.mxu0 %vm169_vm1, %v5311_v38  ;;  %4555 = vmatprep.mubr.msk.f32.mxu1 %vm169_vm1, %v5317_v40  ;;  %v5338_v45 = vld [vmem:[#allocation2 + $0x61] sm:$0xff]  ;;  %261 = vst.msk [vmem:[#allocation2 + $0xb1] sm:$0xff] %vm169_vm1, %v228_v50  ;;  %277 = vst.msk [vmem:[#allocation2 + $0x171] sm:$0xff] %vm169_vm1, %v244_v51  ;;  %v5358_v52 = vld [vmem:[#allocation2 + $0x111] sm:$0xff] }
  0x38   : > { %4534 = vmatprep.mubr.msk.f32.mxu0 %vm169_vm1, %v5319_v41  ;;  %v5362_v53 = vld [vmem:[#allocation2 + $0x69] sm:$0xff]  ;;  %v5364_v54 = vld [vmem:[#allocation2 + $0x121] sm:$0xff]  ;;  %v5438_v12 = vld [vmem:[#allocation2 + $0x18] sm:$0xff]  ;;  %279 = vst.msk [vmem:[#allocation2 + $0x189] sm:$0xff] %vm169_vm1, %v246_v15 }
  0x39   : > { %v5366_v55 = vld [vmem:[#allocation2 + $0x79] sm:$0xff]  ;;  %v5374_v56 = vld [vmem:[#allocation2 + $0x129] sm:$0xff] }
  0x3a   : > { %4556 = vmatmul.mubr.msk.f32.gmra.mxu1 %vm169_vm1, %v5328_v42  ;;  %v5378_v57 = vld [vmem:[#allocation2 + $0x81] sm:$0xff]  ;;  %v5380_v58 = vld [vmem:[#allocation2 + $0x139] sm:$0xff]  ;;  %v5466_v18 = vld [vmem:[#allocation2 + $0x30] sm:$0xff] }
  0x3b   : > { %4535 = vmatmul.mubr.msk.f32.gmra.mxu0 %vm169_vm1, %v5336_v44  ;;  %4558 = vmatprep.mubr.msk.f32.mxu1 %vm169_vm1, %v5334_v43  ;;  %v5382_v59 = vld [vmem:[#allocation2 + $0x91] sm:$0xff]  ;;  %v5390_v60 = vld [vmem:[#allocation2 + $0x141] sm:$0xff] }
  0x3c   : > { %4537 = vmatprep.mubr.msk.f32.mxu0 %vm169_vm1, %v5338_v45  ;;  %v5394_v61 = vld [vmem:[#allocation2 + $0x99] sm:$0xff]  ;;  %v5396_v62 = vld [vmem:[#allocation2 + $0x151] sm:$0xff]  ;;  %v5436_v11 = vld [vmem:[#allocation2 + $0x22] sm:$0xff] }
  0x3d   : > { %v5398_v63 = vld [vmem:[#allocation2 + $0xa9] sm:$0xff]  ;;  %v5406_v0 = vld [vmem:[#allocation2 + $0x159] sm:$0xff]  ;;  %6733 = vst [vmem:[#allocation7_spill] sm:$0xff] %v5436_v11 }
  0x3e   : > { %4559 = vmatmul.mubr.msk.f32.gmra.mxu1 %vm169_vm1, %v5358_v52  ;;  %v5410_v1 = vld [vmem:[#allocation2 + $0xb1] sm:$0xff]  ;;  %v5412_v2 = vld [vmem:[#allocation2 + $0x169] sm:$0xff]  ;;  %v5423_v7 = vld [vmem:[#allocation2 + $0x1a] sm:$0xff] }
  0x3f   : > { %4538 = vmatmul.mubr.msk.f32.gmra.mxu0 %vm169_vm1, %v5362_v53  ;;  %4561 = vmatprep.mubr.msk.f32.mxu1 %vm169_vm1, %v5364_v54  ;;  %v5420_v4 = vld [vmem:[#allocation2 + $0x171] sm:$0xff]  ;;  %6732 = vst [vmem:[#allocation6_spill] sm:$0xff] %v5423_v7  ;;  %v5460_v16 = vld [vmem:[#allocation2 + $0x20] sm:$0xff]  ;;  %v5486_v22 = vld [vmem:[#allocation2 + $0x48] sm:$0xff] }
  0x40   : > { %4540 = vmatprep.mubr.msk.f32.mxu0 %vm169_vm1, %v5366_v55  ;;  %v5444_v13 = vld [vmem:[#allocation2 + $0x32] sm:$0xff]  ;;  %v5462_v17 = vld [vmem:[#allocation2 + $0x3a] sm:$0xff]  ;;  %v5470_v19 = vld [vmem:[#allocation2 + $0x4a] sm:$0xff] }
  0x41   : > { %6734 = vst [vmem:[#allocation8_spill] sm:$0xff] %v5444_v13  ;;  %6735 = vst [vmem:[#allocation9_spill] sm:$0xff] %v5462_v17  ;;  %v5480_v20 = vld [vmem:[#allocation2 + $0x38] sm:$0xff]  ;;  %v5488_v23 = vld [vmem:[#allocation2 + $0x62] sm:$0xff] }
  0x42   : > { %4562 = vmatmul.mubr.msk.f32.gmra.mxu1 %vm169_vm1, %v5374_v56  ;;  %6736 = vst [vmem:[#allocation10_spill] sm:$0xff] %v5470_v19  ;;  %v5484_v21 = vld [vmem:[#allocation2 + $0x52] sm:$0xff]  ;;  %6738 = vst [vmem:[#allocation12_spill] sm:$0xff] %v5488_v23  ;;  %v5500_v25 = vld [vmem:[#allocation2 + $0x6a] sm:$0xff] }
  0x43   : > { %4541 = vmatmul.mubr.msk.f32.gmra.mxu0 %vm169_vm1, %v5378_v57  ;;  %4564 = vmatprep.mubr.msk.f32.mxu1 %vm169_vm1, %v5380_v58  ;;  %6737 = vst [vmem:[#allocation11_spill] sm:$0xff] %v5484_v21  ;;  %v5496_v24 = vld [vmem:[#allocation2 + $0x50] sm:$0xff]  ;;  %6739 = vst [vmem:[#allocation13_spill] sm:$0xff] %v5500_v25  ;;  %v5502_v26 = vld [vmem:[#allocation2 + $0x60] sm:$0xff] }
  0x44   : > { %4543 = vmatprep.mubr.msk.f32.mxu0 %vm169_vm1, %v5382_v59  ;;  %v5504_v27 = vld [vmem:[#allocation2 + $0x7a] sm:$0xff]  ;;  %v5512_v28 = vld [vmem:[#allocation2 + $0x68] sm:$0xff]  ;;  %v5520_v39 = vld [vmem:[#allocation2 + $0x92] sm:$0xff] }
  0x45   : > { %6740 = vst [vmem:[#allocation14_spill] sm:$0xff] %v5504_v27  ;;  %v5518_v36 = vld [vmem:[#allocation2 + $0x78] sm:$0xff]  ;;  %6742 = vst [vmem:[#allocation16_spill] sm:$0xff] %v5520_v39  ;;  %v5528_v46 = vld [vmem:[#allocation2 + $0x80] sm:$0xff] }
  0x46   : > { %4565 = vmatmul.mubr.msk.f32.gmra.mxu1 %vm169_vm1, %v5390_v60  ;;  %v5532_v47 = vld [vmem:[#allocation2 + $0x9a] sm:$0xff]  ;;  %v5534_v48 = vld [vmem:[#allocation2 + $0x90] sm:$0xff] }
  0x47   : > { %4544 = vmatmul.mubr.msk.f32.gmra.mxu0 %vm169_vm1, %v5394_v61  ;;  %4567 = vmatprep.mubr.msk.f32.mxu1 %vm169_vm1, %v5396_v62  ;;  %6743 = vst [vmem:[#allocation17_spill] sm:$0xff] %v5532_v47  ;;  %v5536_v49 = vld [vmem:[#allocation2 + $0xaa] sm:$0xff]  ;;  %v5544_v50 = vld [vmem:[#allocation2 + $0x98] sm:$0xff] }
  0x48   : > { %4546 = vmatprep.mubr.msk.f32.mxu0 %vm169_vm1, %v5398_v63  ;;  %6744 = vst [vmem:[#allocation18_spill] sm:$0xff] %v5536_v49  ;;  %v5548_v51 = vld [vmem:[#allocation2 + $0xb2] sm:$0xff]  ;;  %v5568_v15 = vld [vmem:[#allocation2 + $0xda] sm:$0xff] }
  0x49   : > { %6745 = vst [vmem:[#allocation19_spill] sm:$0xff] %v5548_v51  ;;  %6748 = vst [vmem:[#allocation22_spill] sm:$0xff] %v5568_v15 }
  0x4a   : > { %4568 = vmatmul.mubr.msk.f32.gmra.mxu1 %vm169_vm1, %v5406_v0 }
  0x4b   : > { %4547 = vmatmul.mubr.msk.f32.gmra.mxu0 %vm169_vm1, %v5410_v1  ;;  %4570 = vmatprep.mubr.msk.f32.mxu1 %vm169_vm1, %v5412_v2 }
  0x4c   : > { %4625 = vmatprep.mubr.msk.f32.mxu0 %vm169_vm1, %v996_v3  ;;  %v5550_v3 = vld [vmem:[#allocation2 + $0xa8] sm:$0xff] }
  0x4e   : > { %4571 = vmatmul.mubr.msk.f32.gmra.mxu1 %vm169_vm1, %v5420_v4 }
  0x4f   : > { %4626 = vmatmul.mubr.msk.f32.vlgmr.msra.gmra.mxu0 %vm169_vm1, %v997_v5  ;;  %4575 = vmatprep.mubr.msk.f32.mxu1 %vm169_vm1, %v280_v6  ;;  %v5552_v5 = vld [vmem:[#allocation2 + $0xc2] sm:$0xff]  ;;  %v5560_v6 = vld [vmem:[#allocation2 + $0xb0] sm:$0xff] }
  0x50   : > { %4724 = vmatpush3.msk.msra.mxu0 %vm443_vm0, %v5236_v10  ;;  %4628 = vmatprep.mubr.msk.f32.mxu0 %vm169_vm1, %v5423_v7  ;;  %v245_v10 = vld [vmem:[%s5222_s7 + $0xf0] sm:$0xff]  ;;  %6746 = vst [vmem:[#allocation20_spill] sm:$0xff] %v5552_v5  ;;  %v5678_v7 = vld [vmem:[#allocation2 + $0x168] sm:$0xff]  ;;  %s4225_s7 = sshll.u32 %s5124_s16, 12  ;;  %s6630_s16 = scalar_lea.sflag [#allocation4], %s161_s29 }
  0x51   : > { %4823 = vmatprep.subr.msk.mxu0 %vm443_vm0, %v5428_v8  ;;  %278 = vst.msk [vmem:[#allocation2 + $0x181] sm:$0xff] %vm169_vm1, %v245_v10  ;;  %v5566_v10 = vld [vmem:[#allocation2 + $0xc0] sm:$0xff]  ;;  %s6622_s11 = scalar_lea.hbm %s6673_s3, %s4225_s7 }
  0x52   : > { %4576 = vmatmul.mubr.msk.f32.vlgmr.msra.gmra.mxu1 %vm169_vm1, %v281_v9  ;;  %v5564_v9 = vld [vmem:[#allocation2 + $0xca] sm:$0xff] }
  0x53   : > { %4629 = vmatmul.mubr.msk.f32.gmra.mxu0 %vm169_vm1, %v5436_v11  ;;  %4674 = vmatpush3.msk.msra.mxu1 %vm443_vm0, %v5296_v34  ;;  %v5516_v34 = vld [vmem:[#allocation2 + $0x82] sm:$0xff]  ;;  %6747 = vst [vmem:[#allocation21_spill] sm:$0xff] %v5564_v9  ;;  %v5664_v11 = vld [vmem:[#allocation2 + $0x16a] sm:$0xff] }
  0x54   : > { %4578 = vmatprep.mubr.msk.f32.mxu1 %vm169_vm1, %v5438_v12  ;;  %4631 = vmatprep.mubr.msk.f32.mxu0 %vm169_vm1, %v5444_v13  ;;  %6741 = vst [vmem:[#allocation15_spill] sm:$0xff] %v5516_v34  ;;  %v5662_v13 = vld [vmem:[#allocation2 + $0x150] sm:$0xff]  ;;  %6760 = vst [vmem:[#allocation34_spill] sm:$0xff] %v5664_v11 }
  0x55   : > { %4773 = vmatprep.subr.msk.mxu1 %vm443_vm0, %v5449_v14 }
  0x56   : > { %4579 = vmatmul.mubr.msk.f32.gmra.mxu1 %vm169_vm1, %v5460_v16 }
  0x57   : > { %4632 = vmatmul.mubr.msk.f32.gmra.mxu0 %vm169_vm1, %v5462_v17  ;;  %4581 = vmatprep.mubr.msk.f32.mxu1 %vm169_vm1, %v5466_v18  ;;  %v5648_v17 = vld [vmem:[#allocation2 + $0x152] sm:$0xff] }
  0x58   : > { %4634 = vmatprep.mubr.msk.f32.mxu0 %vm169_vm1, %v5470_v19  ;;  %v5646_v19 = vld [vmem:[#allocation2 + $0x138] sm:$0xff]  ;;  %6758 = vst [vmem:[#allocation32_spill] sm:$0xff] %v5648_v17 }
  0x5a   : > { %4582 = vmatmul.mubr.msk.f32.gmra.mxu1 %vm169_vm1, %v5480_v20 }
  0x5b   : > { %4635 = vmatmul.mubr.msk.f32.gmra.mxu0 %vm169_vm1, %v5484_v21  ;;  %4584 = vmatprep.mubr.msk.f32.mxu1 %vm169_vm1, %v5486_v22  ;;  %v5632_v21 = vld [vmem:[#allocation2 + $0x13a] sm:$0xff] }
  0x5c   : > { %4637 = vmatprep.mubr.msk.f32.mxu0 %vm169_vm1, %v5488_v23  ;;  %v5630_v23 = vld [vmem:[#allocation2 + $0x120] sm:$0xff]  ;;  %6756 = vst [vmem:[#allocation30_spill] sm:$0xff] %v5632_v21 }
  0x5e   : > { %4585 = vmatmul.mubr.msk.f32.gmra.mxu1 %vm169_vm1, %v5496_v24 }
  0x5f   : > { %4638 = vmatmul.mubr.msk.f32.gmra.mxu0 %vm169_vm1, %v5500_v25  ;;  %4587 = vmatprep.mubr.msk.f32.mxu1 %vm169_vm1, %v5502_v26  ;;  %v5616_v25 = vld [vmem:[#allocation2 + $0x122] sm:$0xff] }
  0x60   : > { %4640 = vmatprep.mubr.msk.f32.mxu0 %vm169_vm1, %v5504_v27  ;;  %v5614_v27 = vld [vmem:[#allocation2 + $0x108] sm:$0xff]  ;;  %6754 = vst [vmem:[#allocation28_spill] sm:$0xff] %v5616_v25 }
  0x62   : > { %4588 = vmatmul.mubr.msk.f32.gmra.mxu1 %vm169_vm1, %v5512_v28 }
  0x63   : > { %4641 = vmatmul.mubr.msk.f32.gmra.mxu0 %vm169_vm1, %v5516_v34  ;;  %4590 = vmatprep.mubr.msk.f32.mxu1 %vm169_vm1, %v5518_v36  ;;  %v5600_v34 = vld [vmem:[#allocation2 + $0x10a] sm:$0xff] }
  0x64   : > { %4643 = vmatprep.mubr.msk.f32.mxu0 %vm169_vm1, %v5520_v39  ;;  %v5598_v39 = vld [vmem:[#allocation2 + $0xf0] sm:$0xff]  ;;  %6752 = vst [vmem:[#allocation26_spill] sm:$0xff] %v5600_v34 }
  0x66   : > { %4591 = vmatmul.mubr.msk.f32.gmra.mxu1 %vm169_vm1, %v5528_v46 }
  0x67   : > { %4644 = vmatmul.mubr.msk.f32.gmra.mxu0 %vm169_vm1, %v5532_v47  ;;  %4593 = vmatprep.mubr.msk.f32.mxu1 %vm169_vm1, %v5534_v48  ;;  %v5584_v47 = vld [vmem:[#allocation2 + $0xf2] sm:$0xff] }
  0x68   : > { %4646 = vmatprep.mubr.msk.f32.mxu0 %vm169_vm1, %v5536_v49  ;;  %v5582_v49 = vld [vmem:[#allocation2 + $0xd8] sm:$0xff]  ;;  %6750 = vst [vmem:[#allocation24_spill] sm:$0xff] %v5584_v47 }
  0x6a   : > { %4594 = vmatmul.mubr.msk.f32.gmra.mxu1 %vm169_vm1, %v5544_v50 }
  0x6b   : > { %4647 = vmatmul.mubr.msk.f32.gmra.mxu0 %vm169_vm1, %v5548_v51  ;;  %4596 = vmatprep.mubr.msk.f32.mxu1 %vm169_vm1, %v5550_v3  ;;  %v5576_v51 = vld [vmem:[#allocation2 + $0xc8] sm:$0xff] }
  0x6c   : > { %4649 = vmatprep.mubr.msk.f32.mxu0 %vm169_vm1, %v5552_v5  ;;  %v5580_v5 = vld [vmem:[#allocation2 + $0xe2] sm:$0xff] }
  0x6d   : > { %6749 = vst [vmem:[#allocation23_spill] sm:$0xff] %v5580_v5 }
  0x6e   : > { %4597 = vmatmul.mubr.msk.f32.gmra.mxu1 %vm169_vm1, %v5560_v6 }
  0x6f   : > { %4650 = vmatmul.mubr.msk.f32.gmra.mxu0 %vm169_vm1, %v5564_v9  ;;  %4599 = vmatprep.mubr.msk.f32.mxu1 %vm169_vm1, %v5566_v10  ;;  %v5592_v9 = vld [vmem:[#allocation2 + $0xe0] sm:$0xff] }
  0x70   : > { %4652 = vmatprep.mubr.msk.f32.mxu0 %vm169_vm1, %v5568_v15  ;;  %v5596_v15 = vld [vmem:[#allocation2 + $0xfa] sm:$0xff] }
  0x71   : > { %6751 = vst [vmem:[#allocation25_spill] sm:$0xff] %v5596_v15 }
  0x72   : > { %4600 = vmatmul.mubr.msk.f32.gmra.mxu1 %vm169_vm1, %v5576_v51 }
  0x73   : > { %4653 = vmatmul.mubr.msk.f32.gmra.mxu0 %vm169_vm1, %v5580_v5  ;;  %4602 = vmatprep.mubr.msk.f32.mxu1 %vm169_vm1, %v5582_v49  ;;  %v5608_v5 = vld [vmem:[#allocation2 + $0xf8] sm:$0xff] }
  0x74   : > { %4655 = vmatprep.mubr.msk.f32.mxu0 %vm169_vm1, %v5584_v47  ;;  %v5612_v47 = vld [vmem:[#allocation2 + $0x112] sm:$0xff] }
  0x75   : > { %6753 = vst [vmem:[#allocation27_spill] sm:$0xff] %v5612_v47 }
  0x76   : > { %4603 = vmatmul.mubr.msk.f32.gmra.mxu1 %vm169_vm1, %v5592_v9 }
  0x77   : > { %4656 = vmatmul.mubr.msk.f32.gmra.mxu0 %vm169_vm1, %v5596_v15  ;;  %4605 = vmatprep.mubr.msk.f32.mxu1 %vm169_vm1, %v5598_v39  ;;  %v5624_v15 = vld [vmem:[#allocation2 + $0x110] sm:$0xff] }
  0x78   : > { %4658 = vmatprep.mubr.msk.f32.mxu0 %vm169_vm1, %v5600_v34  ;;  %v5628_v34 = vld [vmem:[#allocation2 + $0x12a] sm:$0xff] }
  0x79   : > { %6755 = vst [vmem:[#allocation29_spill] sm:$0xff] %v5628_v34 }
  0x7a   : > { %4606 = vmatmul.mubr.msk.f32.gmra.mxu1 %vm169_vm1, %v5608_v5 }
  0x7b   : > { %4659 = vmatmul.mubr.msk.f32.gmra.mxu0 %vm169_vm1, %v5612_v47  ;;  %4608 = vmatprep.mubr.msk.f32.mxu1 %vm169_vm1, %v5614_v27  ;;  %v5640_v47 = vld [vmem:[#allocation2 + $0x128] sm:$0xff] }
  0x7c   : > { %4661 = vmatprep.mubr.msk.f32.mxu0 %vm169_vm1, %v5616_v25  ;;  %v5644_v25 = vld [vmem:[#allocation2 + $0x142] sm:$0xff] }
  0x7d   : > { %6757 = vst [vmem:[#allocation31_spill] sm:$0xff] %v5644_v25 }
  0x7e   : > { %4609 = vmatmul.mubr.msk.f32.gmra.mxu1 %vm169_vm1, %v5624_v15 }
  0x7f   : > { %4662 = vmatmul.mubr.msk.f32.gmra.mxu0 %vm169_vm1, %v5628_v34  ;;  %4611 = vmatprep.mubr.msk.f32.mxu1 %vm169_vm1, %v5630_v23  ;;  %v5656_v34 = vld [vmem:[#allocation2 + $0x140] sm:$0xff] }
  0x80   : > { %4664 = vmatprep.mubr.msk.f32.mxu0 %vm169_vm1, %v5632_v21  ;;  %v5660_v21 = vld [vmem:[#allocation2 + $0x15a] sm:$0xff] }
  0x81   : > { %6759 = vst [vmem:[#allocation33_spill] sm:$0xff] %v5660_v21 }
  0x82   : > { %4612 = vmatmul.mubr.msk.f32.gmra.mxu1 %vm169_vm1, %v5640_v47 }
  0x83   : > { %4665 = vmatmul.mubr.msk.f32.gmra.mxu0 %vm169_vm1, %v5644_v25  ;;  %4614 = vmatprep.mubr.msk.f32.mxu1 %vm169_vm1, %v5646_v19  ;;  %v5672_v25 = vld [vmem:[#allocation2 + $0x158] sm:$0xff] }
  0x84   : > { %4667 = vmatprep.mubr.msk.f32.mxu0 %vm169_vm1, %v5648_v17  ;;  %v5676_v17 = vld [vmem:[#allocation2 + $0x172] sm:$0xff] }
  0x86   : > { %4615 = vmatmul.mubr.msk.f32.gmra.mxu1 %vm169_vm1, %v5656_v34 }
  0x87   : > { %4668 = vmatmul.mubr.msk.f32.gmra.mxu0 %vm169_vm1, %v5660_v21  ;;  %4617 = vmatprep.mubr.msk.f32.mxu1 %vm169_vm1, %v5662_v13  ;;  %v5686_v21 = vld [vmem:[#allocation2 + $0x170] sm:$0xff] }
  0x88   : > { %4670 = vmatprep.mubr.msk.f32.mxu0 %vm169_vm1, %v5664_v11  ;;  %v5693_v11 = vld [vmem:[%s6671_s1 + $0x20] sm:$0xf] }
  0x8a   : > { %4618 = vmatmul.mubr.msk.f32.gmra.mxu1 %vm169_vm1, %v5672_v25 }
  0x8b   : > { %4671 = vmatmul.mubr.msk.f32.gmra.mxu0 %vm169_vm1, %v5676_v17  ;;  %4620 = vmatprep.mubr.msk.f32.mxu1 %vm169_vm1, %v5678_v7 }
  0x8c   : > { %4725 = vmatprep.mubr.msk.f32.mxu0 %vm169_vm1, %v5280_v31  ;;  %v5710_v31 = vld [vmem:[%s6671_s1 + $0x1c] sm:$0xf] }
  0x8e   : > { %4621 = vmatmul.mubr.msk.f32.gmra.mxu1 %vm169_vm1, %v5686_v21 }
  0x8f   : > { %4726 = vmatmul.mubr.msk.f32.vlgmr.msra.gmra.mxu0 %vm169_vm1, %v5291_v33  ;;  %4675 = vmatprep.mubr.msk.f32.mxu1 %vm169_vm1, %v5438_v12  ;;  %v5840_v33 = vld [vmem:[#allocation2 + $0x188] sm:$0xff] }
  0x90   : > { %4824 = vmatpush3.msk.msra.mxu0 %vm443_vm0, %v5428_v8  ;;  %4728 = vmatprep.mubr.msk.f32.mxu0 %vm169_vm1, %v5302_v35  ;;  %v6763_v35 = vld [vmem:[#allocation6_spill] sm:$0xff] }
  0x91   : > { %4923 = vmatprep.subr.msk.mxu0 %vm443_vm0, %v5693_v11 }
  0x92   : > { %4676 = vmatmul.mubr.msk.f32.vlgmr.msra.gmra.mxu1 %vm169_vm1, %v5460_v16 }
  0x93   : > { %4729 = vmatmul.mubr.msk.f32.gmra.mxu0 %vm169_vm1, %v5311_v38  ;;  %4774 = vmatpush3.msk.msra.mxu1 %vm443_vm0, %v5449_v14  ;;  %v6765_v38 = vld [vmem:[#allocation8_spill] sm:$0xff]  ;;  %v6783_v14 = vld [vmem:[#allocation26_spill] sm:$0xff] }
  0x94   : > { %4678 = vmatprep.mubr.msk.f32.mxu1 %vm169_vm1, %v5466_v18  ;;  %4731 = vmatprep.mubr.msk.f32.mxu0 %vm169_vm1, %v5319_v41  ;;  %v6767_v41 = vld [vmem:[#allocation10_spill] sm:$0xff] }
  0x95   : > { %4873 = vmatprep.subr.msk.mxu1 %vm443_vm0, %v5710_v31 }
  0x96   : > { %4679 = vmatmul.mubr.msk.f32.gmra.mxu1 %vm169_vm1, %v5480_v20 }
  0x97   : > { %4732 = vmatmul.mubr.msk.f32.gmra.mxu0 %vm169_vm1, %v5336_v44  ;;  %4681 = vmatprep.mubr.msk.f32.mxu1 %vm169_vm1, %v5486_v22  ;;  %v6770_v44 = vld [vmem:[#allocation13_spill] sm:$0xff] }
  0x98   : > { %4734 = vmatprep.mubr.msk.f32.mxu0 %vm169_vm1, %v5338_v45  ;;  %v6771_v45 = vld [vmem:[#allocation14_spill] sm:$0xff] }
  0x9a   : > { %4682 = vmatmul.mubr.msk.f32.gmra.mxu1 %vm169_vm1, %v5496_v24 }
  0x9b   : > { %4735 = vmatmul.mubr.msk.f32.gmra.mxu0 %vm169_vm1, %v5362_v53  ;;  %4684 = vmatprep.mubr.msk.f32.mxu1 %vm169_vm1, %v5502_v26  ;;  %v6773_v53 = vld [vmem:[#allocation16_spill] sm:$0xff] }
  0x9c   : > { %4737 = vmatprep.mubr.msk.f32.mxu0 %vm169_vm1, %v5366_v55  ;;  %v6775_v55 = vld [vmem:[#allocation18_spill] sm:$0xff] }
  0x9e   : > { %4685 = vmatmul.mubr.msk.f32.gmra.mxu1 %vm169_vm1, %v5512_v28 }
  0x9f   : > { %4738 = vmatmul.mubr.msk.f32.gmra.mxu0 %vm169_vm1, %v5378_v57  ;;  %4687 = vmatprep.mubr.msk.f32.mxu1 %vm169_vm1, %v5518_v36  ;;  %v6777_v57 = vld [vmem:[#allocation20_spill] sm:$0xff] }
  0xa0   : > { %4740 = vmatprep.mubr.msk.f32.mxu0 %vm169_vm1, %v5382_v59  ;;  %v6778_v59 = vld [vmem:[#allocation21_spill] sm:$0xff] }
  0xa2   : > { %4688 = vmatmul.mubr.msk.f32.gmra.mxu1 %vm169_vm1, %v5528_v46 }
  0xa3   : > { %4741 = vmatmul.mubr.msk.f32.gmra.mxu0 %vm169_vm1, %v5394_v61  ;;  %4690 = vmatprep.mubr.msk.f32.mxu1 %vm169_vm1, %v5534_v48  ;;  %v6779_v61 = vld [vmem:[#allocation22_spill] sm:$0xff] }
  0xa4   : > { %4743 = vmatprep.mubr.msk.f32.mxu0 %vm169_vm1, %v5398_v63  ;;  %v6780_v63 = vld [vmem:[#allocation23_spill] sm:$0xff] }
  0xa6   : > { %4691 = vmatmul.mubr.msk.f32.gmra.mxu1 %vm169_vm1, %v5544_v50 }
  0xa7   : > { %4744 = vmatmul.mubr.msk.f32.gmra.mxu0 %vm169_vm1, %v5410_v1  ;;  %4693 = vmatprep.mubr.msk.f32.mxu1 %vm169_vm1, %v5550_v3  ;;  %v6781_v1 = vld [vmem:[#allocation24_spill] sm:$0xff] }
  0xa8   : > { %4746 = vmatprep.mubr.msk.f32.mxu0 %vm169_vm1, %v5276_v29  ;;  %v5820_v29 = vld [vmem:[#allocation2 + $0x181] sm:$0xff] }
  0xa9   : > { %6761 = vst [vmem:[#allocation35_spill] sm:$0xff] %v5820_v29 }
  0xaa   : > { %4694 = vmatmul.mubr.msk.f32.gmra.mxu1 %vm169_vm1, %v5560_v6 }
  0xab   : > { %4747 = vmatmul.mubr.msk.f32.gmra.mxu0 %vm169_vm1, %v5278_v30  ;;  %4696 = vmatprep.mubr.msk.f32.mxu1 %vm169_vm1, %v5566_v10  ;;  %v5830_v30 = vld [vmem:[#allocation2 + $0x189] sm:$0xff] }
  0xac   : > { %4749 = vmatprep.mubr.msk.f32.mxu0 %vm169_vm1, %v5289_v32  ;;  %6762 = vst [vmem:[#allocation36_spill] sm:$0xff] %v5830_v30  ;;  %v5832_v32 = vld [vmem:[#allocation2 + $0x180] sm:$0xff] }
  0xae   : > { %4697 = vmatmul.mubr.msk.f32.gmra.mxu1 %vm169_vm1, %v5576_v51 }
  0xaf   : > { %4750 = vmatmul.mubr.msk.f32.gmra.mxu0 %vm169_vm1, %v5309_v37  ;;  %4699 = vmatprep.mubr.msk.f32.mxu1 %vm169_vm1, %v5582_v49  ;;  %v6764_v37 = vld [vmem:[#allocation7_spill] sm:$0xff] }
  0xb0   : > { %4752 = vmatprep.mubr.msk.f32.mxu0 %vm169_vm1, %v5317_v40  ;;  %v6766_v40 = vld [vmem:[#allocation9_spill] sm:$0xff] }
  0xb2   : > { %4700 = vmatmul.mubr.msk.f32.gmra.mxu1 %vm169_vm1, %v5592_v9 }
  0xb3   : > { %4753 = vmatmul.mubr.msk.f32.gmra.mxu0 %vm169_vm1, %v5328_v42  ;;  %4702 = vmatprep.mubr.msk.f32.mxu1 %vm169_vm1, %v5598_v39  ;;  %v6768_v42 = vld [vmem:[#allocation11_spill] sm:$0xff] }
  0xb4   : > { %4755 = vmatprep.mubr.msk.f32.mxu0 %vm169_vm1, %v5334_v43  ;;  %v6769_v43 = vld [vmem:[#allocation12_spill] sm:$0xff] }
  0xb6   : > { %4703 = vmatmul.mubr.msk.f32.gmra.mxu1 %vm169_vm1, %v5608_v5 }
  0xb7   : > { %4756 = vmatmul.mubr.msk.f32.gmra.mxu0 %vm169_vm1, %v5358_v52  ;;  %4705 = vmatprep.mubr.msk.f32.mxu1 %vm169_vm1, %v5614_v27  ;;  %v6772_v52 = vld [vmem:[#allocation15_spill] sm:$0xff] }
  0xb8   : > { %4758 = vmatprep.mubr.msk.f32.mxu0 %vm169_vm1, %v5364_v54  ;;  %v6774_v54 = vld [vmem:[#allocation17_spill] sm:$0xff] }
  0xba   : > { %4706 = vmatmul.mubr.msk.f32.gmra.mxu1 %vm169_vm1, %v5624_v15 }
  0xbb   : > { %4759 = vmatmul.mubr.msk.f32.gmra.mxu0 %vm169_vm1, %v5374_v56  ;;  %4708 = vmatprep.mubr.msk.f32.mxu1 %vm169_vm1, %v5630_v23  ;;  %v6776_v56 = vld [vmem:[#allocation19_spill] sm:$0xff] }
  0xbc   : > { %4761 = vmatprep.mubr.msk.f32.mxu0 %vm169_vm1, %v5380_v58 }
  0xbe   : > { %4709 = vmatmul.mubr.msk.f32.gmra.mxu1 %vm169_vm1, %v5640_v47 }
  0xbf   : > { %4762 = vmatmul.mubr.msk.f32.gmra.mxu0 %vm169_vm1, %v5390_v60  ;;  %4711 = vmatprep.mubr.msk.f32.mxu1 %vm169_vm1, %v5646_v19 }
  0xc0   : > { %4764 = vmatprep.mubr.msk.f32.mxu0 %vm169_vm1, %v5396_v62 }
  0xc2   : > { %4712 = vmatmul.mubr.msk.f32.gmra.mxu1 %vm169_vm1, %v5656_v34 }
  0xc3   : > { %4765 = vmatmul.mubr.msk.f32.gmra.mxu0 %vm169_vm1, %v5406_v0  ;;  %4714 = vmatprep.mubr.msk.f32.mxu1 %vm169_vm1, %v5662_v13 }
  0xc4   : > { %4767 = vmatprep.mubr.msk.f32.mxu0 %vm169_vm1, %v5412_v2 }
  0xc6   : > { %4715 = vmatmul.mubr.msk.f32.gmra.mxu1 %vm169_vm1, %v5672_v25 }
  0xc7   : > { %4768 = vmatmul.mubr.msk.f32.gmra.mxu0 %vm169_vm1, %v5420_v4  ;;  %4717 = vmatprep.mubr.msk.f32.mxu1 %vm169_vm1, %v5678_v7 }
  0xc8   : > { %4770 = vmatprep.mubr.msk.f32.mxu0 %vm169_vm1, %v5820_v29 }
  0xca   : > { %4718 = vmatmul.mubr.msk.f32.gmra.mxu1 %vm169_vm1, %v5686_v21 }
  0xcb   : > { %4771 = vmatmul.mubr.msk.f32.gmra.mxu0 %vm169_vm1, %v5830_v30  ;;  %4720 = vmatprep.mubr.msk.f32.mxu1 %vm169_vm1, %v5832_v32 }
  0xcc   : > { %4825 = vmatprep.mubr.msk.f32.mxu0 %vm169_vm1, %v5466_v18 }
  0xce   : > { %4721 = vmatmul.mubr.msk.f32.gmra.mxu1 %vm169_vm1, %v5840_v33 }
  0xcf   : > { %4826 = vmatmul.mubr.msk.f32.vlgmr.msra.gmra.mxu0 %vm169_vm1, %v5480_v20  ;;  %4775 = vmatprep.mubr.msk.f32.mxu1 %vm169_vm1, %v6763_v35 }
  0xd0   : > { %4924 = vmatpush3.msk.msra.mxu0 %vm443_vm0, %v5693_v11  ;;  %4828 = vmatprep.mubr.msk.f32.mxu0 %vm169_vm1, %v5486_v22  ;;  %v6782_v11 = vld [vmem:[#allocation25_spill] sm:$0xff]  ;;  %v6784_v22 = vld [vmem:[#allocation27_spill] sm:$0xff] }
  0xd2   : > { %4776 = vmatmul.mubr.msk.f32.vlgmr.msra.gmra.mxu1 %vm169_vm1, %v6764_v37 }
  0xd3   : > { %4829 = vmatmul.mubr.msk.f32.gmra.mxu0 %vm169_vm1, %v5496_v24  ;;  %4874 = vmatpush3.msk.msra.mxu1 %vm443_vm0, %v5710_v31  ;;  %v6785_v24 = vld [vmem:[#allocation28_spill] sm:$0xff] }
  0xd4   : > { %4778 = vmatprep.mubr.msk.f32.mxu1 %vm169_vm1, %v6765_v38  ;;  %4831 = vmatprep.mubr.msk.f32.mxu0 %vm169_vm1, %v5502_v26 }
  0xd6   : > { %4779 = vmatmul.mubr.msk.f32.gmra.mxu1 %vm169_vm1, %v6766_v40 }
  0xd7   : > { %4832 = vmatmul.mubr.msk.f32.gmra.mxu0 %vm169_vm1, %v5512_v28  ;;  %4781 = vmatprep.mubr.msk.f32.mxu1 %vm169_vm1, %v6767_v41  ;;  %v6786_v28 = vld [vmem:[#allocation29_spill] sm:$0xff] }
  0xd8   : > { %4834 = vmatprep.mubr.msk.f32.mxu0 %vm169_vm1, %v5518_v36 }
  0xda   : > { %4782 = vmatmul.mubr.msk.f32.gmra.mxu1 %vm169_vm1, %v6768_v42 }
  0xdb   : > { %4835 = vmatmul.mubr.msk.f32.gmra.mxu0 %vm169_vm1, %v5528_v46  ;;  %4784 = vmatprep.mubr.msk.f32.mxu1 %vm169_vm1, %v6769_v43 }
  0xdc   : > { %4837 = vmatprep.mubr.msk.f32.mxu0 %vm169_vm1, %v5534_v48 }
  0xde   : > { %4785 = vmatmul.mubr.msk.f32.gmra.mxu1 %vm169_vm1, %v6770_v44 }
  0xdf   : > { %4838 = vmatmul.mubr.msk.f32.gmra.mxu0 %vm169_vm1, %v5544_v50  ;;  %4787 = vmatprep.mubr.msk.f32.mxu1 %vm169_vm1, %v6771_v45  ;;  %v5912_v58 = vpop.f32.mrf.mxu0  ;;  %v2587_v50 = vld [vmem:[#allocation2 + $0x198] sm:$0xff] }
  0xe0   : > { %4840 = vmatprep.mubr.msk.f32.mxu0 %vm169_vm1, %v5550_v3  ;;  %v6791_v3 = vld [vmem:[#allocation33_spill] sm:$0xff] }
  0xe1   : > { %v5918_v60 = vpop.f32.mrf.mxu0 }
  0xe2   : > { %4788 = vmatmul.mubr.msk.f32.gmra.mxu1 %vm169_vm1, %v6772_v52 }
  0xe3   : > { %4841 = vmatmul.mubr.msk.f32.gmra.mxu0 %vm169_vm1, %v5560_v6  ;;  %4790 = vmatprep.mubr.msk.f32.mxu1 %vm169_vm1, %v6773_v53  ;;  %v2588_v6 = vld [vmem:[#allocation2 + $0x1a0] sm:$0xff] }
  0xe4   : > { %4843 = vmatprep.mubr.msk.f32.mxu0 %vm169_vm1, %v5566_v10 }
  0xe6   : > { %4791 = vmatmul.mubr.msk.f32.gmra.mxu1 %vm169_vm1, %v6774_v54 }
  0xe7   : > { %4844 = vmatmul.mubr.msk.f32.gmra.mxu0 %vm169_vm1, %v5576_v51  ;;  %4793 = vmatprep.mubr.msk.f32.mxu1 %vm169_vm1, %v6775_v55 }
  0xe8   : > { %4846 = vmatprep.mubr.msk.f32.mxu0 %vm169_vm1, %v5582_v49 }
  0xea   : > { %4794 = vmatmul.mubr.msk.f32.gmra.mxu1 %vm169_vm1, %v6776_v56 }
  0xeb   : > { %4847 = vmatmul.mubr.msk.f32.gmra.mxu0 %vm169_vm1, %v5592_v9  ;;  %4796 = vmatprep.mubr.msk.f32.mxu1 %vm169_vm1, %v6777_v57 }
  0xec   : > { %4849 = vmatprep.mubr.msk.f32.mxu0 %vm169_vm1, %v5598_v39 }
  0xee   : > { %4797 = vmatmul.mubr.msk.f32.gmra.mxu1 %vm169_vm1, %v6778_v59 }
  0xef   : > { %4850 = vmatmul.mubr.msk.f32.gmra.mxu0 %vm169_vm1, %v5608_v5  ;;  %4799 = vmatprep.mubr.msk.f32.mxu1 %vm169_vm1, %v6779_v61 }
  0xf0   : > { %4852 = vmatprep.mubr.msk.f32.mxu0 %vm169_vm1, %v5614_v27 }
  0xf2   : > { %v5924_v62 = vpop.f32.mrf.mxu1  ;;  %4800 = vmatmul.mubr.msk.f32.gmra.mxu1 %vm169_vm1, %v6780_v63 }
  0xf3   : > { %v5928_v0 = vpop.f32.mrf.mxu0  ;;  %4853 = vmatmul.mubr.msk.f32.gmra.mxu0 %vm169_vm1, %v5624_v15  ;;  %4802 = vmatprep.mubr.msk.f32.mxu1 %vm169_vm1, %v6781_v1  ;;  %v6019_v15 = vld [vmem:[#allocation2 + $0x182] sm:$0xff] }
  0xf4   : > { %4855 = vmatprep.mubr.msk.f32.mxu0 %vm169_vm1, %v5630_v23  ;;  %v5936_v2 = vpop.f32.mrf.mxu1 }
  0xf5   : > { %v5938_v4 = vpop.f32.mrf.mxu0 }
  0xf6   : > { %v5940_v8 = vpop.f32.mrf.mxu1  ;;  %4803 = vmatmul.mubr.msk.f32.gmra.mxu1 %vm169_vm1, %v6782_v11 }
  0xf7   : > { %v5944_v12 = vpop.f32.mrf.mxu0  ;;  %4856 = vmatmul.mubr.msk.f32.gmra.mxu0 %vm169_vm1, %v5640_v47  ;;  %4805 = vmatprep.mubr.msk.f32.mxu1 %vm169_vm1, %v6783_v14  ;;  %v6788_v47 = vld [vmem:[#allocation31_spill] sm:$0xff] }
  0xf8   : > { %4858 = vmatprep.mubr.msk.f32.mxu0 %vm169_vm1, %v5646_v19  ;;  %v5952_v16 = vpop.f32.mrf.mxu1 }
  0xf9   : > { %v5954_v18 = vpop.f32.mrf.mxu0 }
  0xfa   : > { %v5956_v20 = vpop.f32.mrf.mxu1  ;;  %4806 = vmatmul.mubr.msk.f32.gmra.mxu1 %vm169_vm1, %v6784_v22 }
  0xfb   : > { %v5960_v23 = vpop.f32.mrf.mxu0  ;;  %4859 = vmatmul.mubr.msk.f32.gmra.mxu0 %vm169_vm1, %v5656_v34  ;;  %4808 = vmatprep.mubr.msk.f32.mxu1 %vm169_vm1, %v6785_v24  ;;  %v6787_v34 = vld [vmem:[#allocation30_spill] sm:$0xff] }
  0xfc   : > { %4861 = vmatprep.mubr.msk.f32.mxu0 %vm169_vm1, %v5662_v13  ;;  %v5968_v19 = vpop.f32.mrf.mxu1 }
  0xfd   : > { %v5970_v26 = vpop.f32.mrf.mxu0 }
  0xfe   : > { %v5972_v27 = vpop.f32.mrf.mxu1  ;;  %4809 = vmatmul.mubr.msk.f32.gmra.mxu1 %vm169_vm1, %v6786_v28 }
  0xff   : > { %v5976_v36 = vpop.f32.mrf.mxu0  ;;  %4862 = vmatmul.mubr.msk.f32.gmra.mxu0 %vm169_vm1, %v5672_v25  ;;  %4811 = vmatprep.mubr.msk.f32.mxu1 %vm169_vm1, %v6787_v34  ;;  %v6789_v25 = vld [vmem:[#allocation32_spill] sm:$0xff] }
 0x100   : > { %4864 = vmatprep.mubr.msk.f32.mxu0 %vm169_vm1, %v5678_v7  ;;  %v5984_v13 = vpop.f32.mrf.mxu1 }
 0x101   : > { %v5986_v39 = vpop.f32.mrf.mxu0 }
 0x102   : > { %v5988_v46 = vpop.f32.mrf.mxu1  ;;  %4812 = vmatmul.mubr.msk.f32.gmra.mxu1 %vm169_vm1, %v6788_v47 }
 0x103   : > { %v5992_v48 = vpop.f32.mrf.mxu0  ;;  %4865 = vmatmul.mubr.msk.f32.gmra.mxu0 %vm169_vm1, %v5686_v21  ;;  %4814 = vmatprep.mubr.msk.f32.mxu1 %vm169_vm1, %v6789_v25  ;;  %v6792_v21 = vld [vmem:[#allocation34_spill] sm:$0xff] }
 0x104   : > { %4867 = vmatprep.mubr.msk.f32.mxu0 %vm169_vm1, %v5832_v32  ;;  %v6000_v7 = vpop.f32.mrf.mxu1 }
 0x105   : > { %v6002_v49 = vpop.f32.mrf.mxu0 }
 0x106   : > { %v6004_v51 = vpop.f32.mrf.mxu1  ;;  %4815 = vmatmul.mubr.msk.f32.gmra.mxu1 %vm169_vm1, %v6791_v3 }
 0x107   : > { %6790 = vst [vmem:[#allocation6_spill] sm:$0xff] %v6004_v51  ;;  %v6008_v5 = vpop.f32.mrf.mxu0  ;;  %4868 = vmatmul.mubr.msk.f32.gmra.mxu0 %vm169_vm1, %v5840_v33  ;;  %4817 = vmatprep.mubr.msk.f32.mxu1 %vm169_vm1, %v6792_v21  ;;  %v6030_v33 = vld [vmem:[#allocation2 + $0x18a] sm:$0xff]  ;;  %v2948_v21 = vld [vmem:[#allocation2 + $0x39] sm:$0xff] }
 0x108   : > { %4870 = vmatprep.mubr.msk.f32.mxu0 %vm169_vm1, %v2587_v50  ;;  %v6015_v9 = vpop.f32.mrf.mxu1  ;;  %v2947_v50 = vld [vmem:[#allocation2 + $0x31] sm:$0xff] }
 0x109   : > { %6793 = vst [vmem:[#allocation7_spill] sm:$0xff] %v6015_v9  ;;  %v6017_v10 = vpop.f32.mrf.mxu0 }
 0x10a   : > { %v6021_v31 = vpop.f32.mrf.mxu1  ;;  %4818 = vmatmul.mubr.msk.f32.gmra.mxu1 %vm169_vm1, %v5676_v17 }
 0x10b   : > { %6794 = vst [vmem:[#allocation8_spill] sm:$0xff] %v6021_v31  ;;  %v6025_v32 = vpop.f32.mrf.mxu0  ;;  %4871 = vmatmul.mubr.msk.f32.gmra.mxu0 %vm169_vm1, %v2588_v6  ;;  %4820 = vmatprep.mubr.msk.f32.mxu1 %vm169_vm1, %v6019_v15 }
 0x10c   : > { %4925 = vmatprep.mubr.msk.f32.mxu0 %vm169_vm1, %v6765_v38  ;;  %v6034_v35 = vpop.f32.mrf.mxu1 }
 0x10d   : > { %6795 = vst [vmem:[#allocation9_spill] sm:$0xff] %v6034_v35  ;;  %v6036_v37 = vpop.f32.mrf.mxu0  ;;  %v2949_v35 = vld [vmem:[#allocation2 + $0x49] sm:$0xff] }
 0x10e   : > { %v6038_v3 = vpop.f32.mrf.mxu1  ;;  %4821 = vmatmul.mubr.msk.f32.gmra.mxu1 %vm169_vm1, %v6030_v33 }
 0x10f   : > { %6796 = vst [vmem:[#allocation10_spill] sm:$0xff] %v6038_v3  ;;  %v4627_v17 = vpop.f32.mrf.mxu0  ;;  %4926 = vmatmul.mubr.msk.f32.vlgmr.msra.gmra.mxu0 %vm169_vm1, %v6766_v40  ;;  %4875 = vmatprep.mubr.msk.f32.mxu1 %vm169_vm1, %v2947_v50  ;;  %v2950_v40 = vld [vmem:[#allocation2 + $0x51] sm:$0xff] }
 0x110   : > { %4928 = vmatprep.mubr.msk.f32.mxu0 %vm169_vm1, %v6767_v41  ;;  %v6047_v38 = vpop.f32.mrf.mxu1 }
 0x111   : > { %6797 = vst [vmem:[#allocation11_spill] sm:$0xff] %v6047_v38  ;;  %v1195_v6 = vpop.f32.mrf.mxu0  ;;  %v2951_v38 = vld [vmem:[#allocation2 + $0x61] sm:$0xff] }
 0x112   : > { %v4577_v31 = vpop.f32.mrf.mxu1  ;;  %4876 = vmatmul.mubr.msk.f32.vlgmr.msra.gmra.mxu1 %vm169_vm1, %v2948_v21 }
 0x113   : > { %v4630_v3 = vpop.f32.mrf.mxu0  ;;  %4929 = vmatmul.mubr.msk.f32.gmra.mxu0 %vm169_vm1, %v6768_v42  ;;  %v843_v30 = vadd.f32 %v4577_v31, %v5912_v58  ;;  %4878 = vmatprep.mubr.msk.f32.mxu1 %vm169_vm1, %v2949_v35 }
 0x114   : > { %4931 = vmatprep.mubr.msk.f32.mxu0 %vm169_vm1, %v6769_v43  ;;  %v837_v41 = vpop.f32.mrf.mxu1  ;;  %v2952_v43 = vld [vmem:[#allocation2 + $0x69] sm:$0xff] }
 0x115   : > { %v1205_v50 = vpop.f32.mrf.mxu0  ;;  %v6056_v9 = vadd.f32 %v4627_v17, %v843_v30  ;;  %v838_v29 = vadd.f32 %v837_v41, %v5918_v60  ;;  %v2953_v60 = vld [vmem:[#allocation2 + $0x79] sm:$0xff] }
 0x116   : > { %v4580_v21 = vpop.f32.mrf.mxu1  ;;  %4879 = vmatmul.mubr.msk.f32.gmra.mxu1 %vm169_vm1, %v2950_v40 }
 0x117   : > { %v4633_v51 = vpop.f32.mrf.mxu0  ;;  %4932 = vmatmul.mubr.msk.f32.gmra.mxu0 %vm169_vm1, %v6770_v44  ;;  %v6062_v42 = vadd.f32 %v1195_v6, %v838_v29  ;;  %v853_v58 = vadd.f32 %v4580_v21, %v5928_v0  ;;  %4881 = vmatprep.mubr.msk.f32.mxu1 %vm169_vm1, %v2951_v38 }
 0x118   : > { %4934 = vmatprep.mubr.msk.f32.mxu0 %vm169_vm1, %v6771_v45  ;;  %v847_v30 = vpop.f32.mrf.mxu1  ;;  %v2954_v45 = vld [vmem:[#allocation2 + $0x81] sm:$0xff] }
 0x119   : > { %v1215_v31 = vpop.f32.mrf.mxu0  ;;  %v6068_v35 = vadd.f32 %v4630_v3, %v853_v58  ;;  %v848_v17 = vadd.f32 %v847_v30, %v5938_v4  ;;  %v2955_v4 = vld [vmem:[#allocation2 + $0x91] sm:$0xff] }
 0x11a   : > { %v4583_v40 = vpop.f32.mrf.mxu1  ;;  %4882 = vmatmul.mubr.msk.f32.gmra.mxu1 %vm169_vm1, %v2952_v43 }
 0x11b   : > { %v4636_v29 = vpop.f32.mrf.mxu0  ;;  %4935 = vmatmul.mubr.msk.f32.gmra.mxu0 %vm169_vm1, %v6772_v52  ;;  %v6074_v44 = vadd.f32 %v1205_v50, %v848_v17  ;;  %v863_v0 = vadd.f32 %v4583_v40, %v5944_v12  ;;  %4884 = vmatprep.mubr.msk.f32.mxu1 %vm169_vm1, %v2953_v60 }
 0x11c   : > { %4937 = vmatprep.mubr.msk.f32.mxu0 %vm169_vm1, %v6773_v53  ;;  %v857_v3 = vpop.f32.mrf.mxu1  ;;  %v2956_v53 = vld [vmem:[#allocation2 + $0x99] sm:$0xff] }
 0x11d   : > { %v1225_v38 = vpop.f32.mrf.mxu0  ;;  %v6080_v6 = vadd.f32 %v4633_v51, %v863_v0  ;;  %v858_v41 = vadd.f32 %v857_v3, %v5954_v18  ;;  %v2957_v18 = vld [vmem:[#allocation2 + $0xa9] sm:$0xff] }
 0x11e   : > { %v4586_v21 = vpop.f32.mrf.mxu1  ;;  %4885 = vmatmul.mubr.msk.f32.gmra.mxu1 %vm169_vm1, %v2954_v45 }
 0x11f   : > { %v4639_v52 = vpop.f32.mrf.mxu0  ;;  %4938 = vmatmul.mubr.msk.f32.gmra.mxu0 %vm169_vm1, %v6774_v54  ;;  %v6086_v12 = vadd.f32 %v1215_v31, %v858_v41  ;;  %v873_v50 = vadd.f32 %v4586_v21, %v5960_v23  ;;  %4887 = vmatprep.mubr.msk.f32.mxu1 %vm169_vm1, %v2955_v4 }
 0x120   : > { %4940 = vmatprep.mubr.msk.f32.mxu0 %vm169_vm1, %v6775_v55  ;;  %v867_v51 = vpop.f32.mrf.mxu1  ;;  %v2958_v55 = vld [vmem:[#allocation2 + $0xb1] sm:$0xff] }
 0x121   : > { %v1235_v58 = vpop.f32.mrf.mxu0  ;;  %v6092_v43 = vadd.f32 %v4636_v29, %v873_v50  ;;  %v868_v30 = vadd.f32 %v867_v51, %v5970_v26  ;;  %v2959_v26 = vld [vmem:[#allocation2 + $0xc1] sm:$0xff] }
 0x122   : > { %v4589_v60 = vpop.f32.mrf.mxu1  ;;  %4888 = vmatmul.mubr.msk.f32.gmra.mxu1 %vm169_vm1, %v2956_v53 }
 0x123   : > { %v4642_v54 = vpop.f32.mrf.mxu0  ;;  %4941 = vmatmul.mubr.msk.f32.gmra.mxu0 %vm169_vm1, %v6776_v56  ;;  %v6098_v23 = vadd.f32 %v1225_v38, %v868_v30  ;;  %v883_v31 = vadd.f32 %v4589_v60, %v5976_v36  ;;  %4890 = vmatprep.mubr.msk.f32.mxu1 %vm169_vm1, %v2957_v18 }
 0x124   : > { %4943 = vmatprep.mubr.msk.f32.mxu0 %vm169_vm1, %v6777_v57  ;;  %v877_v17 = vpop.f32.mrf.mxu1  ;;  %v2960_v57 = vld [vmem:[#allocation2 + $0xc9] sm:$0xff] }
 0x125   : > { %v1245_v40 = vpop.f32.mrf.mxu0  ;;  %v6104_v29 = vadd.f32 %v4639_v52, %v883_v31  ;;  %v878_v0 = vadd.f32 %v877_v17, %v5986_v39  ;;  %v2961_v39 = vld [vmem:[#allocation2 + $0xd9] sm:$0xff] }
 0x126   : > { %v4592_v45 = vpop.f32.mrf.mxu1  ;;  %4891 = vmatmul.mubr.msk.f32.gmra.mxu1 %vm169_vm1, %v2958_v55 }
 0x127   : > { %v4645_v56 = vpop.f32.mrf.mxu0  ;;  %4944 = vmatmul.mubr.msk.f32.gmra.mxu0 %vm169_vm1, %v6778_v59  ;;  %v6110_v36 = vadd.f32 %v1235_v58, %v878_v0  ;;  %v893_v3 = vadd.f32 %v4592_v45, %v5992_v48  ;;  %4893 = vmatprep.mubr.msk.f32.mxu1 %vm169_vm1, %v2959_v26 }
 0x128   : > { %4946 = vmatprep.mubr.msk.f32.mxu0 %vm169_vm1, %v6779_v61  ;;  %v887_v38 = vpop.f32.mrf.mxu1  ;;  %v2962_v61 = vld [vmem:[#allocation2 + $0xe1] sm:$0xff] }
 0x129   : > { %v1255_v4 = vpop.f32.mrf.mxu0  ;;  %v6116_v41 = vadd.f32 %v4642_v54, %v893_v3  ;;  %v888_v21 = vadd.f32 %v887_v38, %v6002_v49  ;;  %v2963_v49 = vld [vmem:[#allocation2 + $0xf1] sm:$0xff] }
 0x12a   : > { %v4595_v52 = vpop.f32.mrf.mxu1  ;;  %4894 = vmatmul.mubr.msk.f32.gmra.mxu1 %vm169_vm1, %v2960_v57 }
 0x12b   : > { %v4648_v59 = vpop.f32.mrf.mxu0  ;;  %4947 = vmatmul.mubr.msk.f32.gmra.mxu0 %vm169_vm1, %v6780_v63  ;;  %v6122_v48 = vadd.f32 %v1245_v40, %v888_v21  ;;  %v903_v50 = vadd.f32 %v4595_v52, %v6008_v5  ;;  %4896 = vmatprep.mubr.msk.f32.mxu1 %vm169_vm1, %v2961_v39 }
 0x12c   : > { %4949 = vmatprep.mubr.msk.f32.mxu0 %vm169_vm1, %v6781_v1  ;;  %v897_v53 = vpop.f32.mrf.mxu1  ;;  %v2964_v1 = vld [vmem:[#allocation2 + $0xf9] sm:$0xff] }
 0x12d   : > { %v1265_v51 = vpop.f32.mrf.mxu0  ;;  %v6128_v58 = vadd.f32 %v4645_v56, %v903_v50  ;;  %v898_v18 = vadd.f32 %v897_v53, %v6017_v10  ;;  %v2965_v10 = vld [vmem:[#allocation2 + $0x109] sm:$0xff] }
 0x12e   : > { %v4598_v30 = vpop.f32.mrf.mxu1  ;;  %4897 = vmatmul.mubr.msk.f32.gmra.mxu1 %vm169_vm1, %v2962_v61  ;;  %v3362_v61 = vld [vmem:[#allocation2 + $0x15a] sm:$0xff] }
 0x12f   : > { %v4651_v63 = vpop.f32.mrf.mxu0  ;;  %4950 = vmatmul.mubr.msk.f32.gmra.mxu0 %vm169_vm1, %v6782_v11  ;;  %v6134_v5 = vadd.f32 %v1255_v4, %v898_v18  ;;  %v913_v60 = vadd.f32 %v4598_v30, %v6025_v32  ;;  %4899 = vmatprep.mubr.msk.f32.mxu1 %vm169_vm1, %v2963_v49  ;;  %v3363_v49 = vld [vmem:[#allocation2 + $0x16a] sm:$0xff] }
 0x130   : > { %4952 = vmatprep.mubr.msk.f32.mxu0 %vm169_vm1, %v6783_v14  ;;  %v907_v54 = vpop.f32.mrf.mxu1  ;;  %v2966_v14 = vld [vmem:[#allocation2 + $0x111] sm:$0xff] }
 0x131   : > { %v1275_v31 = vpop.f32.mrf.mxu0  ;;  %v6140_v55 = vadd.f32 %v4648_v59, %v913_v60  ;;  %v908_v17 = vadd.f32 %v907_v54, %v6036_v37  ;;  %v2967_v37 = vld [vmem:[#allocation2 + $0x121] sm:$0xff] }
 0x132   : > { %v4601_v40 = vpop.f32.mrf.mxu1  ;;  %4900 = vmatmul.mubr.msk.f32.gmra.mxu1 %vm169_vm1, %v2964_v1  ;;  %v3364_v1 = vld [vmem:[#allocation2 + $0x172] sm:$0xff] }
 0x133   : > { %v4654_v11 = vpop.f32.mrf.mxu0  ;;  %4953 = vmatmul.mubr.msk.f32.gmra.mxu0 %vm169_vm1, %v6784_v22  ;;  %v6146_v32 = vadd.f32 %v1265_v51, %v908_v17  ;;  %v923_v26 = vadd.f32 %v4601_v40, %v5924_v62  ;;  %4902 = vmatprep.mubr.msk.f32.mxu1 %vm169_vm1, %v2965_v10  ;;  %v2971_v51 = vld [vmem:[#allocation2 + $0x151] sm:$0xff]  ;;  %v2973_v10 = vld [vmem:[#allocation2 + $0x169] sm:$0xff] }
 0x134   : > { %4955 = vmatprep.mubr.msk.f32.mxu0 %vm169_vm1, %v6785_v24  ;;  %v917_v0 = vpop.f32.mrf.mxu1  ;;  %v2968_v24 = vld [vmem:[#allocation2 + $0x129] sm:$0xff] }
 0x135   : > { %v1285_v45 = vpop.f32.mrf.mxu0  ;;  %v6152_v56 = vadd.f32 %v4651_v63, %v923_v26  ;;  %v918_v3 = vadd.f32 %v917_v0, %v5936_v2  ;;  %v2969_v2 = vld [vmem:[#allocation2 + $0x139] sm:$0xff] }
 0x136   : > { %v4604_v57 = vpop.f32.mrf.mxu1  ;;  %4903 = vmatmul.mubr.msk.f32.gmra.mxu1 %vm169_vm1, %v2966_v14  ;;  %v2974_v14 = vld [vmem:[#allocation2 + $0x171] sm:$0xff] }
 0x137   : > { %v4657_v22 = vpop.f32.mrf.mxu0  ;;  %4956 = vmatmul.mubr.msk.f32.gmra.mxu0 %vm169_vm1, %v6786_v28  ;;  %v6158_v62 = vadd.f32 %v1275_v31, %v918_v3  ;;  %v933_v38 = vadd.f32 %v4604_v57, %v5940_v8  ;;  %4905 = vmatprep.mubr.msk.f32.mxu1 %vm169_vm1, %v2967_v37  ;;  %v3367_v37 = vld [vmem:[#allocation2 + $0x19a] sm:$0xff] }
 0x138   : > { %4958 = vmatprep.mubr.msk.f32.mxu0 %vm169_vm1, %v6787_v34  ;;  %v927_v4 = vpop.f32.mrf.mxu1  ;;  %v2970_v34 = vld [vmem:[#allocation2 + $0x141] sm:$0xff] }
 0x139   : > { %v1295_v39 = vpop.f32.mrf.mxu0  ;;  %v6164_v21 = vadd.f32 %v4654_v11, %v933_v38  ;;  %v928_v52 = vadd.f32 %v927_v4, %v5952_v16  ;;  %v6798_v38 = vld [vmem:[#allocation6_spill] sm:$0xff]  ;;  %v6799_v4 = vld [vmem:[#allocation35_spill] sm:$0xff] }
 0x13a   : > { %v4607_v59 = vpop.f32.mrf.mxu1  ;;  %4906 = vmatmul.mubr.msk.f32.gmra.mxu1 %vm169_vm1, %v2968_v24 }
 0x13b   : > { %v4660_v28 = vpop.f32.mrf.mxu0  ;;  %4959 = vmatmul.mubr.msk.f32.gmra.mxu0 %vm169_vm1, %v6788_v47  ;;  %v6170_v8 = vadd.f32 %v1285_v45, %v928_v52  ;;  %v943_v50 = vadd.f32 %v4607_v59, %v5956_v20  ;;  %4908 = vmatprep.mubr.msk.f32.mxu1 %vm169_vm1, %v2969_v2  ;;  %v6800_v59 = vld [vmem:[#allocation7_spill] sm:$0xff] }
 0x13c   : > { %4961 = vmatprep.mubr.msk.f32.mxu0 %vm169_vm1, %v6789_v25  ;;  %v937_v53 = vpop.f32.mrf.mxu1  ;;  %v2972_v25 = vld [vmem:[#allocation2 + $0x159] sm:$0xff] }
 0x13d   : > { %v1305_v16 = vpop.f32.mrf.mxu0  ;;  %v6176_v18 = vadd.f32 %v4657_v22, %v943_v50  ;;  %v938_v30 = vadd.f32 %v937_v53, %v5968_v19  ;;  %v6802_v53 = vld [vmem:[#allocation8_spill] sm:$0xff] }
 0x13e   : > { %v4610_v47 = vpop.f32.mrf.mxu1  ;;  %4909 = vmatmul.mubr.msk.f32.gmra.mxu1 %vm169_vm1, %v2970_v34  ;;  %v6801_v34 = vld [vmem:[#allocation36_spill] sm:$0xff] }
 0x13f   : > { %v4663_v63 = vpop.f32.mrf.mxu0  ;;  %4962 = vmatmul.mubr.msk.f32.gmra.mxu0 %vm169_vm1, %v3362_v61  ;;  %v6181_v20 = vadd.f32 %v1295_v39, %v938_v30  ;;  %v953_v60 = vadd.f32 %v4610_v47, %v5972_v27  ;;  %4911 = vmatprep.mubr.msk.f32.mxu1 %vm169_vm1, %v2971_v51  ;;  %v2978_v51 = vld [vmem:[#allocation2 + $0x1a1] sm:$0xff] }
 0x140   : > { %4964 = vmatprep.mubr.msk.f32.mxu0 %vm169_vm1, %v3363_v49  ;;  %v947_v54 = vpop.f32.mrf.mxu1 }
 0x141   : > { %v1315_v31 = vpop.f32.mrf.mxu0  ;;  %v6186_v19 = vadd.f32 %v4660_v28, %v953_v60  ;;  %v948_v17 = vadd.f32 %v947_v54, %v5984_v13 }
 0x142   : > { %v4613_v40 = vpop.f32.mrf.mxu1  ;;  %4912 = vmatmul.mubr.msk.f32.gmra.mxu1 %vm169_vm1, %v2972_v25 }
 0x143   : > { %v4666_v11 = vpop.f32.mrf.mxu0  ;;  %4965 = vmatmul.mubr.msk.f32.gmra.mxu0 %vm169_vm1, %v3364_v1  ;;  %v6191_v27 = vadd.f32 %v1305_v16, %v948_v17  ;;  %v963_v26 = vadd.f32 %v4613_v40, %v5988_v46  ;;  %4914 = vmatprep.mubr.msk.f32.mxu1 %vm169_vm1, %v2973_v10 }
 0x144   : > { %4967 = vmatprep.mubr.msk.f32.mxu0 %vm169_vm1, %v6019_v15  ;;  %v957_v0 = vpop.f32.mrf.mxu1  ;;  %v3368_v15 = vld [vmem:[#allocation2 + $0x1a2] sm:$0xff] }
 0x145   : > { %v1325_v45 = vpop.f32.mrf.mxu0  ;;  %v6197_v13 = vadd.f32 %v4663_v63, %v963_v26  ;;  %v958_v3 = vadd.f32 %v957_v0, %v6000_v7  ;;  %v2977_v7 = vld [vmem:[#allocation2 + $0x199] sm:$0xff]  ;;  %v6803_v63 = vld [vmem:[#allocation9_spill] sm:$0xff] }
 0x146   : > { %v4616_v57 = vpop.f32.mrf.mxu1  ;;  %4915 = vmatmul.mubr.msk.f32.gmra.mxu1 %vm169_vm1, %v2974_v14  ;;  %v6805_v26 = vld [vmem:[#allocation11_spill] sm:$0xff] }
 0x147   : > { %v4669_v22 = vpop.f32.mrf.mxu0  ;;  %4968 = vmatmul.mubr.msk.f32.gmra.mxu0 %vm169_vm1, %v6030_v33  ;;  %v6203_v46 = vadd.f32 %v1315_v31, %v958_v3  ;;  %v973_v24 = vadd.f32 %v4616_v57, %v6798_v38  ;;  %4917 = vmatprep.mubr.msk.f32.mxu1 %vm169_vm1, %v6799_v4  ;;  %v6804_v31 = vld [vmem:[#allocation10_spill] sm:$0xff] }
 0x148   : > { %4970 = vmatprep.mubr.msk.f32.mxu0 %vm169_vm1, %v3367_v37  ;;  %v967_v39 = vpop.f32.mrf.mxu1 }
 0x149   : > { %v1335_v2 = vpop.f32.mrf.mxu0  ;;  %v6209_v52 = vadd.f32 %v4666_v11, %v973_v24  ;;  %v968_v28 = vadd.f32 %v967_v39, %v6800_v59 }
 0x14a   : > { %v4619_v50 = vpop.f32.mrf.mxu1  ;;  %4918 = vmatmul.mubr.msk.f32.gmra.mxu1 %vm169_vm1, %v6801_v34 }
 0x14b   : > { %v4672_v33 = vpop.f32.mrf.mxu0  ;;  %4971 = vmatmul.mubr.msk.f32.gmra.mxu0 %vm169_vm1, %v3368_v15  ;;  %v6215_v61 = vadd.f32 %v1325_v45, %v968_v28  ;;  %v983_v16 = vadd.f32 %v4619_v50, %v6802_v53  ;;  %4920 = vmatprep.mubr.msk.f32.mxu1 %vm169_vm1, %v2977_v7 }
 0x14c   : > { %v977_v49 = vpop.f32.mrf.mxu1 }
 0x14d   : > { %v1345_v30 = vpop.f32.mrf.mxu0  ;;  %v6219_v47 = vadd.f32 %v4669_v22, %v983_v16  ;;  %v978_v60 = vadd.f32 %v977_v49, %v6803_v63 }
 0x14e   : > { %v4622_v25 = vpop.f32.mrf.mxu1  ;;  %4921 = vmatmul.mubr.msk.f32.gmra.mxu1 %vm169_vm1, %v2978_v51 }
 0x14f   : > { %v4727_v1 = vpop.f32.mrf.mxu0  ;;  %v6223_v54 = vadd.f32 %v1335_v2, %v978_v60  ;;  %v993_v10 = vadd.f32 %v4622_v25, %v6804_v31 }
 0x150   : > { %v987_v17 = vpop.f32.mrf.mxu1 }
 0x151   : > { %v1975_v40 = vpop.f32.mrf.mxu0  ;;  %v6226_v11 = vadd.f32 %v4672_v33, %v993_v10  ;;  %v988_v14 = vadd.f32 %v987_v17, %v6805_v26 }
 0x152   : > { %v4677_v0 = vpop.f32.mrf.mxu1 }
 0x153   : > { %v4730_v45 = vpop.f32.mrf.mxu0  ;;  %v6229_v37 = vadd.f32 %v1345_v30, %v988_v14  ;;  %v1745_v3 = vadd.f32 %v4677_v0, %v6056_v9 }
 0x154   : > { %v1585_v57 = vpop.f32.mrf.mxu1 }
 0x155   : > { %v1985_v22 = vpop.f32.mrf.mxu0  ;;  %v6232_v38 = vadd.f32 %v4727_v1, %v1745_v3  ;;  %v1744_v24 = vadd.f32 %v1585_v57, %v6062_v42 }
 0x156   : > { %v4680_v4 = vpop.f32.mrf.mxu1 }
 0x157   : > { %v4733_v15 = vpop.f32.mrf.mxu0  ;;  %v6235_v39 = vadd.f32 %v1975_v40, %v1744_v24  ;;  %v1747_v2 = vadd.f32 %v4680_v4, %v6068_v35 }
 0x158   : > { %v1595_v7 = vpop.f32.mrf.mxu1 }
 0x159   : > { %v1995_v59 = vpop.f32.mrf.mxu0  ;;  %v6238_v28 = vadd.f32 %v4730_v45, %v1747_v2  ;;  %v1746_v50 = vadd.f32 %v1595_v7, %v6074_v44 }
 0x15a   : > { %v4683_v34 = vpop.f32.mrf.mxu1 }
 0x15b   : > { %v4736_v9 = vpop.f32.mrf.mxu0  ;;  %v6241_v33 = vadd.f32 %v1985_v22, %v1746_v50  ;;  %v1749_v53 = vadd.f32 %v4683_v34, %v6080_v6 }
 0x15c   : > { %v1605_v16 = vpop.f32.mrf.mxu1 }
 0x15d   : > { %v2005_v42 = vpop.f32.mrf.mxu0  ;;  %v6244_v51 = vadd.f32 %v4733_v15, %v1749_v53  ;;  %v1748_v49 = vadd.f32 %v1605_v16, %v6086_v12 }
 0x15e   : > { %v4686_v30 = vpop.f32.mrf.mxu1 }
 0x15f   : > { %v4739_v35 = vpop.f32.mrf.mxu0  ;;  %v6247_v63 = vadd.f32 %v1995_v59, %v1748_v49  ;;  %v1751_v60 = vadd.f32 %v4686_v30, %v6092_v43 }
 0x160   : > { %v1615_v25 = vpop.f32.mrf.mxu1 }
 0x161   : > { %v2015_v44 = vpop.f32.mrf.mxu0  ;;  %v6250_v1 = vadd.f32 %v4736_v9, %v1751_v60  ;;  %v1750_v31 = vadd.f32 %v1615_v25, %v6098_v23 }
 0x162   : > { %v4689_v10 = vpop.f32.mrf.mxu1 }
 0x163   : > { %v4742_v6 = vpop.f32.mrf.mxu0  ;;  %v6253_v17 = vadd.f32 %v2005_v42, %v1750_v31  ;;  %v1753_v40 = vadd.f32 %v4689_v10, %v6104_v29 }
 0x164   : > { %v1625_v26 = vpop.f32.mrf.mxu1 }
 0x165   : > { %v2025_v12 = vpop.f32.mrf.mxu0  ;;  %v6256_v14 = vadd.f32 %v4739_v35, %v1753_v40  ;;  %v1752_v0 = vadd.f32 %v1625_v26, %v6110_v36 }
 0x166   : > { %v4692_v45 = vpop.f32.mrf.mxu1 }
 0x167   : > { %v4745_v43 = vpop.f32.mrf.mxu0  ;;  %v6259_v3 = vadd.f32 %v2015_v44, %v1752_v0  ;;  %v1755_v57 = vadd.f32 %v4692_v45, %v6116_v41 }
 0x168   : > { %v1635_v22 = vpop.f32.mrf.mxu1 }
 0x169   : > { %v2035_v23 = vpop.f32.mrf.mxu0  ;;  %v6262_v24 = vadd.f32 %v4742_v6, %v1755_v57  ;;  %v1754_v4 = vadd.f32 %v1635_v22, %v6122_v48 }
 0x16a   : > { %v4695_v15 = vpop.f32.mrf.mxu1 }
 0x16b   : > { %v4748_v29 = vpop.f32.mrf.mxu0  ;;  %v6265_v2 = vadd.f32 %v2025_v12, %v1754_v4  ;;  %v1757_v7 = vadd.f32 %v4695_v15, %v6128_v58 }
 0x16c   : > { %v1645_v59 = vpop.f32.mrf.mxu1 }
 0x16d   : > { %v2045_v36 = vpop.f32.mrf.mxu0  ;;  %v6268_v50 = vadd.f32 %v4745_v43, %v1757_v7  ;;  %v1756_v34 = vadd.f32 %v1645_v59, %v6134_v5 }
 0x16e   : > { %v4698_v9 = vpop.f32.mrf.mxu1 }
 0x16f   : > { %v4751_v41 = vpop.f32.mrf.mxu0  ;;  %v6271_v53 = vadd.f32 %v2035_v23, %v1756_v34  ;;  %v1759_v16 = vadd.f32 %v4698_v9, %v6140_v55 }
 0x170   : > { %v1655_v42 = vpop.f32.mrf.mxu1 }
 0x171   : > { %v2055_v48 = vpop.f32.mrf.mxu0  ;;  %v6274_v49 = vadd.f32 %v4748_v29, %v1759_v16  ;;  %v1758_v30 = vadd.f32 %v1655_v42, %v6146_v32 }
 0x172   : > { %v4701_v35 = vpop.f32.mrf.mxu1 }
 0x173   : > { %v4754_v58 = vpop.f32.mrf.mxu0  ;;  %v6277_v60 = vadd.f32 %v2045_v36, %v1758_v30  ;;  %v1761_v25 = vadd.f32 %v4701_v35, %v6152_v56 }
 0x174   : > { %v1665_v44 = vpop.f32.mrf.mxu1 }
 0x175   : > { %v2065_v5 = vpop.f32.mrf.mxu0  ;;  %v6280_v31 = vadd.f32 %v4751_v41, %v1761_v25  ;;  %v1760_v10 = vadd.f32 %v1665_v44, %v6158_v62 }
 0x176   : > { %v4704_v6 = vpop.f32.mrf.mxu1 }
 0x177   : > { %v4757_v55 = vpop.f32.mrf.mxu0  ;;  %v6283_v40 = vadd.f32 %v2055_v48, %v1760_v10  ;;  %v1763_v26 = vadd.f32 %v4704_v6, %v6164_v21 }
 0x178   : > { %v1675_v12 = vpop.f32.mrf.mxu1 }
 0x179   : > { %v2075_v32 = vpop.f32.mrf.mxu0  ;;  %v6286_v0 = vadd.f32 %v4754_v58, %v1763_v26  ;;  %v1762_v45 = vadd.f32 %v1675_v12, %v6170_v8 }
 0x17a   : > { %v4707_v43 = vpop.f32.mrf.mxu1 }
 0x17b   : > { %6806 = vst [vmem:[#allocation12_spill] sm:$0xff] %v6286_v0  ;;  %v4760_v56 = vpop.f32.mrf.mxu0  ;;  %v6289_v57 = vadd.f32 %v2065_v5, %v1762_v45  ;;  %v1765_v22 = vadd.f32 %v4707_v43, %v6176_v18 }
 0x17c   : > { %v1685_v23 = vpop.f32.mrf.mxu1 }
 0x17d   : > { %6807 = vst [vmem:[#allocation13_spill] sm:$0xff] %v6289_v57  ;;  %v2085_v62 = vpop.f32.mrf.mxu0  ;;  %v6292_v4 = vadd.f32 %v4757_v55, %v1765_v22  ;;  %v1764_v15 = vadd.f32 %v1685_v23, %v6181_v20 }
 0x17e   : > { %v4710_v29 = vpop.f32.mrf.mxu1 }
 0x17f   : > { %6808 = vst [vmem:[#allocation14_spill] sm:$0xff] %v6292_v4  ;;  %v4763_v21 = vpop.f32.mrf.mxu0  ;;  %v6295_v7 = vadd.f32 %v2075_v32, %v1764_v15  ;;  %v1767_v59 = vadd.f32 %v4710_v29, %v6186_v19 }
 0x180   : > { %v1695_v36 = vpop.f32.mrf.mxu1 }
 0x181   : > { %6809 = vst [vmem:[#allocation15_spill] sm:$0xff] %v6295_v7  ;;  %v2095_v8 = vpop.f32.mrf.mxu0  ;;  %v6298_v34 = vadd.f32 %v4760_v56, %v1767_v59  ;;  %v1766_v9 = vadd.f32 %v1695_v36, %v6191_v27 }
 0x182   : > { %v4713_v41 = vpop.f32.mrf.mxu1 }
 0x183   : > { %6810 = vst [vmem:[#allocation16_spill] sm:$0xff] %v6298_v34  ;;  %v4766_v18 = vpop.f32.mrf.mxu0  ;;  %v6301_v16 = vadd.f32 %v2085_v62, %v1766_v9  ;;  %v1769_v42 = vadd.f32 %v4713_v41, %v6197_v13 }
 0x184   : > { %v1705_v48 = vpop.f32.mrf.mxu1 }
 0x185   : > { %6811 = vst [vmem:[#allocation17_spill] sm:$0xff] %v6301_v16  ;;  %v2105_v20 = vpop.f32.mrf.mxu0  ;;  %v6304_v30 = vadd.f32 %v4763_v21, %v1769_v42  ;;  %v1768_v35 = vadd.f32 %v1705_v48, %v6203_v46 }
 0x186   : > { %v4716_v58 = vpop.f32.mrf.mxu1 }
 0x187   : > { %6812 = vst [vmem:[#allocation18_spill] sm:$0xff] %v6304_v30  ;;  %v4769_v19 = vpop.f32.mrf.mxu0  ;;  %v6307_v25 = vadd.f32 %v2095_v8, %v1768_v35  ;;  %v1771_v44 = vadd.f32 %v4716_v58, %v6209_v52 }
 0x188   : > { %v1715_v5 = vpop.f32.mrf.mxu1 }
 0x189   : > { %6813 = vst [vmem:[#allocation19_spill] sm:$0xff] %v6307_v25  ;;  %v2115_v27 = vpop.f32.mrf.mxu0  ;;  %v6310_v10 = vadd.f32 %v4766_v18, %v1771_v44  ;;  %v1770_v6 = vadd.f32 %v1715_v5, %v6215_v61 }
 0x18a   : > { %v4719_v55 = vpop.f32.mrf.mxu1 }
 0x18b   : > { %6814 = vst [vmem:[#allocation20_spill] sm:$0xff] %v6310_v10  ;;  %v4772_v13 = vpop.f32.mrf.mxu0  ;;  %v6313_v26 = vadd.f32 %v2105_v20, %v1770_v6  ;;  %v1773_v12 = vadd.f32 %v4719_v55, %v6219_v47 }
 0x18c   : > { %v1725_v32 = vpop.f32.mrf.mxu1 }
 0x18d   : > { %6815 = vst [vmem:[#allocation21_spill] sm:$0xff] %v6313_v26  ;;  %v2125_v46 = vpop.f32.mrf.mxu0  ;;  %v6316_v45 = vadd.f32 %v4769_v19, %v1773_v12  ;;  %v1772_v43 = vadd.f32 %v1725_v32, %v6223_v54 }
 0x18e   : > { %v4722_v56 = vpop.f32.mrf.mxu1 }
 0x18f   : > { %6816 = vst [vmem:[#allocation22_spill] sm:$0xff] %v6316_v45  ;;  %v6319_v52 = vpop.f32.mrf.mxu0  ;;  %v6321_v22 = vadd.f32 %v2115_v27, %v1772_v43  ;;  %v1775_v23 = vadd.f32 %v4722_v56, %v6226_v11 }
 0x190   : > { %v1735_v61 = vpop.f32.mrf.mxu1 }
 0x191   : > { %6817 = vst [vmem:[#allocation23_spill] sm:$0xff] %v6321_v22  ;;  %v6324_v62 = vpop.f32.mrf.mxu0  ;;  %v6326_v15 = vadd.f32 %v4772_v13, %v1775_v23  ;;  %v1774_v47 = vadd.f32 %v1735_v61, %v6229_v37 }
 0x192   : > { %v4777_v29 = vpop.f32.mrf.mxu1 }
 0x193   : > { %6818 = vst [vmem:[#allocation24_spill] sm:$0xff] %v6326_v15  ;;  %v6329_v21 = vpop.f32.mrf.mxu0  ;;  %v6331_v59 = vadd.f32 %v2125_v46, %v1774_v47 }
 0x194   : > { %v2365_v54 = vpop.f32.mrf.mxu1 }
 0x195   : > { %6819 = vst [vmem:[#allocation25_spill] sm:$0xff] %v6331_v59  ;;  %v6333_v36 = vpop.f32.mrf.mxu0 }
 0x196   : > { %v6335_v8 = vpop.f32.mrf.mxu1 }
 0x197   : > { %v6337_v9 = vpop.f32.mrf.mxu0 }
 0x198   : > { %v6339_v11 = vpop.f32.mrf.mxu1 }
 0x199   : > { %v6341_v41 = vpop.f32.mrf.mxu0 }
 0x19a   : > { %v6343_v18 = vpop.f32.mrf.mxu1 }
 0x19b   : > { %v6345_v42 = vpop.f32.mrf.mxu0 }
 0x19c   : > { %v6347_v37 = vpop.f32.mrf.mxu1 }
 0x19d   : > { %v6349_v48 = vpop.f32.mrf.mxu0 }
 0x19e   : > { %v6351_v20 = vpop.f32.mrf.mxu1 }
 0x19f   : > { %v6353_v35 = vpop.f32.mrf.mxu0 }
 0x1a0   : > { %v6355_v58 = vpop.f32.mrf.mxu1 }
 0x1a1   : > { %v6357_v19 = vpop.f32.mrf.mxu0 }
 0x1a2   : > { %v6359_v44 = vpop.f32.mrf.mxu1 }
 0x1a3   : > { %v6361_v5 = vpop.f32.mrf.mxu0 }
 0x1a4   : > { %v6363_v27 = vpop.f32.mrf.mxu1 }
 0x1a5   : > { %v6365_v6 = vpop.f32.mrf.mxu0 }
 0x1a6   : > { %v6367_v55 = vpop.f32.mrf.mxu1 }
 0x1a7   : > { %v6369_v13 = vpop.f32.mrf.mxu0 }
 0x1a8   : > { %v6371_v12 = vpop.f32.mrf.mxu1 }
 0x1a9   : > { %v6373_v32 = vpop.f32.mrf.mxu0 }
 0x1aa   : > { %v6375_v46 = vpop.f32.mrf.mxu1 }
 0x1ab   : > { %v6377_v43 = vpop.f32.mrf.mxu0 }
 0x1ac   : > { %v6379_v56 = vpop.f32.mrf.mxu1 }
 0x1ad   : > { %v6381_v23 = vpop.f32.mrf.mxu0 }
 0x1ae   : > { %v6383_v61 = vpop.f32.mrf.mxu1 }
 0x1af   : > { %v6385_v47 = vpop.f32.mrf.mxu0 }
 0x1b0   : > { %v6387_v59 = vpop.f32.mrf.mxu1 }
 0x1b1   : > { %v6389_v15 = vpop.f32.mrf.mxu0 }
 0x1b2   : > { %6820 = vst [vmem:[#allocation26_spill] sm:$0xff] %v6389_v15  ;;  %v6391_v22 = vpop.f32.mrf.mxu1 }
 0x1b3   : > { %v6393_v45 = vpop.f32.mrf.mxu0 }
 0x1b4   : > { %6821 = vst [vmem:[#allocation27_spill] sm:$0xff] %v6393_v45  ;;  %v6395_v26 = vpop.f32.mrf.mxu1 }
 0x1b5   : > { %v6397_v10 = vpop.f32.mrf.mxu0 }
 0x1b6   : > { %6822 = vst [vmem:[#allocation28_spill] sm:$0xff] %v6397_v10  ;;  %v6399_v25 = vpop.f32.mrf.mxu1 }
 0x1b7   : > { %6823 = vst [vmem:[#allocation29_spill] sm:$0xff] %v6399_v25  ;;  %v6401_v30 = vpop.f32.mrf.mxu0 }
 0x1b8   : > { %6824 = vst [vmem:[#allocation30_spill] sm:$0xff] %v6401_v30  ;;  %v6403_v16 = vpop.f32.mrf.mxu1 }
 0x1b9   : > { %6825 = vst [vmem:[#allocation31_spill] sm:$0xff] %v6403_v16  ;;  %v6405_v34 = vpop.f32.mrf.mxu0 }
 0x1ba   : > { %6826 = vst [vmem:[#allocation32_spill] sm:$0xff] %v6405_v34  ;;  %v6407_v7 = vpop.f32.mrf.mxu1 }
 0x1bb   : > { %6827 = vst [vmem:[#allocation33_spill] sm:$0xff] %v6407_v7  ;;  %v6409_v4 = vpop.f32.mrf.mxu0 }
 0x1bc   : > { %6828 = vst [vmem:[#allocation34_spill] sm:$0xff] %v6409_v4  ;;  %v6411_v57 = vpop.f32.mrf.mxu1 }
 0x1bd   : > { %6829 = vst [vmem:[#allocation6_spill] sm:$0xff] %v6411_v57  ;;  %v6413_v15 = vpop.f32.mrf.mxu0 }
 0x1be   : > { %6830 = vst [vmem:[#allocation35_spill] sm:$0xff] %v6413_v15  ;;  %v6415_v45 = vpop.f32.mrf.mxu1 }
 0x1bf   : > { %6831 = vst [vmem:[#allocation7_spill] sm:$0xff] %v6415_v45  ;;  %v6417_v0 = vpop.f32.mrf.mxu0 }
 0x1c0   : > { %6832 = vst [vmem:[#allocation36_spill] sm:$0xff] %v6417_v0  ;;  %v6419_v10 = vpop.f32.mrf.mxu1 }
 0x1c1   : > { %6833 = vst [vmem:[#allocation8_spill] sm:$0xff] %v6419_v10  ;;  %v6421_v25 = vpop.f32.mrf.mxu0 }
 0x1c2   : > { %6834 = vst [vmem:[#allocation9_spill] sm:$0xff] %v6421_v25  ;;  %v6423_v30 = vpop.f32.mrf.mxu1 }
 0x1c3   : > { %6835 = vst [vmem:[#allocation10_spill] sm:$0xff] %v6423_v30  ;;  %v6425_v16 = vpop.f32.mrf.mxu0 }
 0x1c4   : > { %6836 = vst [vmem:[#allocation11_spill] sm:$0xff] %v6425_v16  ;;  %v6427_v34 = vpop.f32.mrf.mxu1 }
 0x1c5   : > { %6837 = vst [vmem:[#allocation37_spill] sm:$0xff] %v6427_v34  ;;  %v6429_v7 = vpop.f32.mrf.mxu0  ;;  %v2525_v34 = vadd.f32 %v4777_v29, %v6232_v38  ;;  %v2526_v38 = vadd.f32 %v6339_v11, %v6241_v33  ;;  %v2528_v33 = vadd.f32 %v6347_v37, %v6247_v63 }
 0x1c6   : > { %6838 = vst [vmem:[#allocation38_spill] sm:$0xff] %v6429_v7  ;;  %v6431_v4 = vpop.f32.mrf.mxu1 }
 0x1c7   : > { %6839 = vst [vmem:[#allocation39_spill] sm:$0xff] %v6431_v4  ;;  %v6433_v57 = vpop.f32.mrf.mxu0  ;;  %v2919_v37 = vadd.f32 %v6341_v41, %v2528_v33  ;;  %v2533_v41 = vadd.f32 %v6359_v44, %v6256_v14 }
 0x1c8   : > { %6840 = vst [vmem:[#allocation40_spill] sm:$0xff] %v6433_v57  ;;  %v6435_v15 = vpop.f32.mrf.mxu1  ;;  %v2524_v57 = vadd.f32 %v2365_v54, %v6235_v39  ;;  %v2529_v39 = vadd.f32 %v6343_v18, %v6244_v51  ;;  %v6465_v54 = vld [vmem:[%s6672_s2] ss:$0 sm:$0xff]  ;;  %v2917_v51 = vadd.f32 %v6333_v36, %v2526_v38  ;;  %v2530_v36 = vadd.f32 %v6355_v58, %v6253_v17 }
 0x1c9   : > { %6841 = vst [vmem:[#allocation41_spill] sm:$0xff] %v6435_v15  ;;  %v6437_v0 = vpop.f32.mrf.mxu0 }
 0x1ca   : > { %6842 = vst [vmem:[#allocation42_spill] sm:$0xff] %v6437_v0  ;;  %v6439_v10 = vpop.f32.mrf.mxu1  ;;  %v2916_v0 = vadd.f32 %v6319_v52, %v2525_v34  ;;  %v2921_v33 = vadd.f32 %v6349_v48, %v2530_v36 }
 0x1cb   : > { %6843 = vst [vmem:[#allocation43_spill] sm:$0xff] %v6439_v10  ;;  %v6441_v25 = vpop.f32.mrf.mxu0 }
 0x1cc   : > { %6844 = vst [vmem:[#allocation44_spill] sm:$0xff] %v6441_v25  ;;  %v6443_v30 = vpop.f32.mrf.mxu1  ;;  %v2527_v25 = vadd.f32 %v6335_v8, %v6238_v28 }
 0x1cd   : > { %6845 = vst [vmem:[#allocation45_spill] sm:$0xff] %v6443_v30  ;;  %v6445_v16 = vpop.f32.mrf.mxu0 }
 0x1ce   : > { %6846 = vst [vmem:[#allocation46_spill] sm:$0xff] %v6445_v16  ;;  %v6448_v7 = vpop.f32.mrf.mxu1  ;;  %v2915_v16 = vadd.f32 %v6324_v62, %v2524_v57  ;;  %v2918_v28 = vadd.f32 %v6329_v21, %v2527_v25  ;;  %v2531_v25 = vadd.f32 %v6351_v20, %v6250_v1 }
 0x1cf   : > { %6847 = vst [vmem:[#allocation47_spill] sm:$0xff] %v6448_v7  ;;  %v4927_v4 = vpop.f32.mrf.mxu0 }
 0x1d0   : > { %v6451_v45 = vpop.f32.mrf.mxu1 }
 0x1d1   : > { %6848 = vst [vmem:[#allocation48_spill] sm:$0xff] %v6451_v45  ;;  %v3536_v15 = vpop.f32.mrf.mxu0  ;;  %v2920_v45 = vadd.f32 %v6337_v9, %v2529_v39 }
 0x1d2   : > { %v4877_v10 = vpop.f32.mrf.mxu1 }
 0x1d3   : > { %v4930_v30 = vpop.f32.mrf.mxu0  ;;  %v3306_v29 = vadd.f32 %v4877_v10, %v2916_v0 }
 0x1d4   : > { %v3146_v34 = vpop.f32.mrf.mxu1 }
 0x1d5   : > { %v3546_v52 = vpop.f32.mrf.mxu0  ;;  %v3696_v8 = vadd.f32 %v4927_v4, %v3306_v29  ;;  %v3305_v57 = vadd.f32 %v3146_v34, %v2915_v16 }
 0x1d6   : > { %v4880_v0 = vpop.f32.mrf.mxu1 }
 0x1d7   : > { %v4933_v10 = vpop.f32.mrf.mxu0  ;;  %v3735_v62 = vadd.f32 %v6465_v54, %v3696_v8  ;;  %v3695_v11 = vadd.f32 %v3536_v15, %v3305_v57  ;;  %v3308_v18 = vadd.f32 %v4880_v0, %v2918_v28 }
 0x1d8   : > { %v3156_v21 = vpop.f32.mrf.mxu1 }
 0x1d9   : > { %v3556_v7 = vpop.f32.mrf.mxu0  ;;  %v3767_v4 = vmax.f32 %v3735_v62, 0.0  ;;  %v3734_v16 = vadd.f32 %v6465_v54, %v3695_v11  ;;  %v3698_v29 = vadd.f32 %v4930_v30, %v3308_v18  ;;  %v3307_v63 = vadd.f32 %v3156_v21, %v2917_v51 }
 0x1da   : > { %v4883_v38 = vpop.f32.mrf.mxu1  ;;  %v2922_v30 = vadd.f32 %v6345_v42, %v2531_v25  ;;  %v2924_v62 = vadd.f32 %v6353_v35, %v2533_v41 }
 0x1db   : > { %v4936_v15 = vpop.f32.mrf.mxu0  ;;  %3799 = vst [vmem:[%s6481_s6 + $0x8] sm:$0xff] %v3767_v4  ;;  %v3766_v1 = vmax.f32 %v3734_v16, 0.0  ;;  %v3737_v9 = vadd.f32 %v6465_v54, %v3698_v29  ;;  %v3697_v20 = vadd.f32 %v3546_v52, %v3307_v63  ;;  %v3310_v39 = vadd.f32 %v4883_v38, %v2920_v45 }
 0x1dc   : > { %v3166_v34 = vpop.f32.mrf.mxu1  ;;  %v2532_v52 = vadd.f32 %v6363_v27, %v6259_v3 }
 0x1dd   : > { %v3566_v17 = vpop.f32.mrf.mxu0  ;;  %3798 = vst [vmem:[%s6481_s6] sm:$0xff] %v3766_v1  ;;  %v3769_v58 = vmax.f32 %v3737_v9, 0.0  ;;  %v3736_v28 = vadd.f32 %v6465_v54, %v3697_v20  ;;  %v3700_v8 = vadd.f32 %v4933_v10, %v3310_v39  ;;  %v3309_v57 = vadd.f32 %v3166_v34, %v2919_v37 }
 0x1de   : > { %v4886_v45 = vpop.f32.mrf.mxu1  ;;  %v2535_v10 = vadd.f32 %v6367_v55, %v6262_v24  ;;  %v2923_v21 = vadd.f32 %v6357_v19, %v2532_v52  ;;  %v2537_v37 = vadd.f32 %v6375_v46, %v6268_v50  ;;  %v2536_v9 = vadd.f32 %v6379_v56, %v6271_v53 }
 0x1df   : > { %v4939_v0 = vpop.f32.mrf.mxu0  ;;  %3801 = vst [vmem:[%s6481_s6 + $0x18] sm:$0xff] %v3769_v58  ;;  %v3768_v42 = vmax.f32 %v3736_v28, 0.0  ;;  %v3739_v14 = vadd.f32 %v6465_v54, %v3700_v8  ;;  %v3699_v44 = vadd.f32 %v3556_v7, %v3309_v57  ;;  %v3312_v51 = vadd.f32 %v4886_v45, %v2922_v30 }
 0x1e0   : > { %v3176_v11 = vpop.f32.mrf.mxu1  ;;  %v2534_v7 = vadd.f32 %v6371_v12, %v6265_v2  ;;  %v2926_v63 = vadd.f32 %v6361_v5, %v2535_v10  ;;  %v2928_v41 = vadd.f32 %v6369_v13, %v2537_v37  ;;  %v2539_v34 = vadd.f32 %v6383_v61, %v6274_v49 }
 0x1e1   : > { %v3576_v18 = vpop.f32.mrf.mxu0  ;;  %3800 = vst [vmem:[%s6481_s6 + $0x10] sm:$0xff] %v3768_v42  ;;  %v3771_v48 = vmax.f32 %v3739_v14, 0.0  ;;  %v3738_v3 = vadd.f32 %v6465_v54, %v3699_v44  ;;  %v3702_v27 = vadd.f32 %v4936_v15, %v3312_v51  ;;  %v3311_v25 = vadd.f32 %v3176_v11, %v2921_v33 }
 0x1e2   : > { %v4889_v4 = vpop.f32.mrf.mxu1  ;;  %v2925_v1 = vadd.f32 %v6365_v6, %v2534_v7  ;;  %v2927_v8 = vadd.f32 %v6373_v32, %v2536_v9  ;;  %v2538_v57 = vadd.f32 %v6387_v59, %v6277_v60  ;;  %v2541_v42 = vadd.f32 %v6391_v22, %v6280_v31  ;;  %v6856_v9 = vld [vmem:[#allocation33_spill] sm:$0xff] }
 0x1e3   : > { %v4942_v16 = vpop.f32.mrf.mxu0  ;;  %3803 = vst [vmem:[%s6481_s6 + $0x28] sm:$0xff] %v3771_v48  ;;  %v3770_v35 = vmax.f32 %v3738_v3, 0.0  ;;  %v3741_v24 = vadd.f32 %v6465_v54, %v3702_v27  ;;  %v3701_v55 = vadd.f32 %v3566_v17, %v3311_v25  ;;  %v3314_v29 = vadd.f32 %v4889_v4, %v2924_v62  ;;  %v6849_v27 = vld [vmem:[#allocation12_spill] sm:$0xff]  ;;  %v6850_v25 = vld [vmem:[#allocation29_spill] sm:$0xff] }
 0x1e4   : > { %v3186_v36 = vpop.f32.mrf.mxu1  ;;  %v2929_v62 = vadd.f32 %v6381_v23, %v2538_v57  ;;  %v2540_v10 = vadd.f32 %v6395_v26, %v6283_v40  ;;  %v2932_v3 = vadd.f32 %v6385_v47, %v2541_v42 }
 0x1e5   : > { %v3586_v38 = vpop.f32.mrf.mxu0  ;;  %3802 = vst [vmem:[%s6481_s6 + $0x20] sm:$0xff] %v3770_v35  ;;  %v3773_v19 = vmax.f32 %v3741_v24, 0.0  ;;  %v3740_v2 = vadd.f32 %v6465_v54, %v3701_v55  ;;  %v3704_v12 = vadd.f32 %v4939_v0, %v3314_v29  ;;  %v3313_v15 = vadd.f32 %v3186_v36, %v2923_v21  ;;  %v6851_v35 = vld [vmem:[#allocation26_spill] sm:$0xff]  ;;  %v6852_v55 = vld [vmem:[#allocation13_spill] sm:$0xff]  ;;  %v6853_v29 = vld [vmem:[#allocation31_spill] sm:$0xff] }
 0x1e6   : > { %v4892_v20 = vpop.f32.mrf.mxu1  ;;  %v2930_v0 = vadd.f32 %v6377_v43, %v2539_v34  ;;  %v2543_v21 = vadd.f32 %v6850_v25, %v6849_v27  ;;  %v2931_v24 = vadd.f32 %v6851_v35, %v2540_v10  ;;  %v6857_v34 = vld [vmem:[#allocation28_spill] sm:$0xff]  ;;  %v6864_v10 = vld [vmem:[#allocation17_spill] sm:$0xff]  ;;  %v6866_v25 = vld [vmem:[#allocation34_spill] sm:$0xff] }
 0x1e7   : > { %v4945_v39 = vpop.f32.mrf.mxu0  ;;  %3805 = vst [vmem:[%s6481_s6 + $0x38] sm:$0xff] %v3773_v19  ;;  %v3772_v5 = vmax.f32 %v3740_v2, 0.0  ;;  %v3743_v50 = vadd.f32 %v6465_v54, %v3704_v12  ;;  %v3703_v46 = vadd.f32 %v3576_v18, %v3313_v15  ;;  %v3316_v30 = vadd.f32 %v4892_v20, %v2926_v63  ;;  %v6854_v12 = vld [vmem:[#allocation27_spill] sm:$0xff] }
 0x1e8   : > { %v3196_v17 = vpop.f32.mrf.mxu1  ;;  %v2542_v63 = vadd.f32 %v6853_v29, %v6852_v55  ;;  %v2934_v15 = vadd.f32 %v6854_v12, %v2543_v21  ;;  %v6869_v29 = vld [vmem:[#allocation35_spill] sm:$0xff] }
 0x1e9   : > { %v3596_v58 = vpop.f32.mrf.mxu0  ;;  %3804 = vst [vmem:[%s6481_s6 + $0x30] sm:$0xff] %v3772_v5  ;;  %v3775_v6 = vmax.f32 %v3743_v50, 0.0  ;;  %v3742_v53 = vadd.f32 %v6465_v54, %v3703_v46  ;;  %v3706_v56 = vadd.f32 %v4942_v16, %v3316_v30  ;;  %v3315_v28 = vadd.f32 %v3196_v17, %v2925_v1  ;;  %v6855_v1 = vld [vmem:[#allocation14_spill] sm:$0xff] }
 0x1ea   : > { %v4895_v33 = vpop.f32.mrf.mxu1  ;;  %v2545_v20 = vadd.f32 %v6856_v9, %v6855_v1  ;;  %v2933_v17 = vadd.f32 %v6857_v34, %v2542_v63  ;;  %v6872_v9 = vld [vmem:[#allocation36_spill] sm:$0xff] }
 0x1eb   : > { %v4948_v52 = vpop.f32.mrf.mxu0  ;;  %3807 = vst [vmem:[%s6481_s6 + $0x48] sm:$0xff] %v3775_v6  ;;  %v3774_v13 = vmax.f32 %v3742_v53, 0.0  ;;  %v3745_v49 = vadd.f32 %v6465_v54, %v3706_v56  ;;  %v3705_v61 = vadd.f32 %v3586_v38, %v3315_v28  ;;  %v3318_v45 = vadd.f32 %v4895_v33, %v2928_v41  ;;  %v6859_v6 = vld [vmem:[#allocation6_spill] sm:$0xff] }
 0x1ec   : > { %v3206_v14 = vpop.f32.mrf.mxu1 }
 0x1ed   : > { %v3606_v44 = vpop.f32.mrf.mxu0  ;;  %3806 = vst [vmem:[%s6481_s6 + $0x40] sm:$0xff] %v3774_v13  ;;  %v3777_v32 = vmax.f32 %v3745_v49, 0.0  ;;  %v3744_v60 = vadd.f32 %v6465_v54, %v3705_v61  ;;  %v3708_v59 = vadd.f32 %v4945_v39, %v3318_v45  ;;  %v3317_v51 = vadd.f32 %v3206_v14, %v2927_v8  ;;  %v6860_v13 = vld [vmem:[#allocation30_spill] sm:$0xff]  ;;  %v6861_v61 = vld [vmem:[#allocation16_spill] sm:$0xff]  ;;  %v6862_v45 = vld [vmem:[#allocation7_spill] sm:$0xff] }
 0x1ee   : > { %v4898_v11 = vpop.f32.mrf.mxu1  ;;  %v2936_v49 = vadd.f32 %v6860_v13, %v2545_v20 }
 0x1ef   : > { %v4951_v18 = vpop.f32.mrf.mxu0  ;;  %3809 = vst [vmem:[%s6481_s6 + $0x58] sm:$0xff] %v3777_v32  ;;  %v3776_v43 = vmax.f32 %v3744_v60, 0.0  ;;  %v3747_v31 = vadd.f32 %v6465_v54, %v3708_v59  ;;  %v3707_v22 = vadd.f32 %v3596_v58, %v3317_v51  ;;  %v3320_v48 = vadd.f32 %v4898_v11, %v2930_v0  ;;  %v6858_v58 = vld [vmem:[#allocation15_spill] sm:$0xff]  ;;  %v6863_v51 = vld [vmem:[#allocation32_spill] sm:$0xff] }
 0x1f0   : > { %v3216_v7 = vpop.f32.mrf.mxu1  ;;  %v2544_v53 = vadd.f32 %v6859_v6, %v6858_v58  ;;  %v2547_v0 = vadd.f32 %v6862_v45, %v6861_v61  ;;  %v6865_v11 = vld [vmem:[#allocation8_spill] sm:$0xff]  ;;  %v6875_v6 = vld [vmem:[#allocation9_spill] sm:$0xff]  ;;  %v6878_v45 = vld [vmem:[#allocation11_spill] sm:$0xff] }
 0x1f1   : > { %v3616_v4 = vpop.f32.mrf.mxu0  ;;  %3808 = vst [vmem:[%s6481_s6 + $0x50] sm:$0xff] %v3776_v43  ;;  %v3779_v23 = vmax.f32 %v3747_v31, 0.0  ;;  %v3746_v40 = vadd.f32 %v6465_v54, %v3707_v22  ;;  %v3710_v26 = vadd.f32 %v4948_v52, %v3320_v48  ;;  %v3319_v16 = vadd.f32 %v3216_v7, %v2929_v62  ;;  %v6867_v7 = vld [vmem:[#allocation18_spill] sm:$0xff] }
 0x1f2   : > { %v4901_v37 = vpop.f32.mrf.mxu1  ;;  %v2935_v62 = vadd.f32 %v6863_v51, %v2544_v53  ;;  %v2938_v21 = vadd.f32 %v6866_v25, %v2547_v0 }
 0x1f3   : > { %v4954_v36 = vpop.f32.mrf.mxu0  ;;  %3811 = vst [vmem:[%s6481_s6 + $0x68] sm:$0xff] %v3779_v23  ;;  %v3778_v47 = vmax.f32 %v3746_v40, 0.0  ;;  %v3749_v38 = vadd.f32 %v6465_v54, %v3710_v26  ;;  %v3709_v19 = vadd.f32 %v3606_v44, %v3319_v16  ;;  %v3322_v2 = vadd.f32 %v4901_v37, %v2932_v3  ;;  %v6870_v37 = vld [vmem:[#allocation19_spill] sm:$0xff] }
 0x1f4   : > { %v3226_v39 = vpop.f32.mrf.mxu1 }
 0x1f5   : > { %v3626_v5 = vpop.f32.mrf.mxu0  ;;  %3810 = vst [vmem:[%s6481_s6 + $0x60] sm:$0xff] %v3778_v47  ;;  %v3781_v50 = vmax.f32 %v3749_v38, 0.0  ;;  %v3748_v46 = vadd.f32 %v6465_v54, %v3709_v19  ;;  %v3712_v30 = vadd.f32 %v4951_v18, %v3322_v2  ;;  %v3321_v41 = vadd.f32 %v3226_v39, %v2931_v24  ;;  %v6873_v39 = vld [vmem:[#allocation20_spill] sm:$0xff] }
 0x1f6   : > { %v4904_v56 = vpop.f32.mrf.mxu1  ;;  %v2546_v18 = vadd.f32 %v6865_v11, %v6864_v10  ;;  %v6881_v11 = vld [vmem:[#allocation38_spill] sm:$0xff] }
 0x1f7   : > { %v4957_v28 = vpop.f32.mrf.mxu0  ;;  %3813 = vst [vmem:[%s6481_s6 + $0x78] sm:$0xff] %v3781_v50  ;;  %v3780_v8 = vmax.f32 %v3748_v46, 0.0  ;;  %v3751_v57 = vadd.f32 %v6465_v54, %v3712_v30  ;;  %v3711_v33 = vadd.f32 %v3616_v4, %v3321_v41  ;;  %v3324_v52 = vadd.f32 %v4904_v56, %v2934_v15  ;;  %v6868_v4 = vld [vmem:[#allocation10_spill] sm:$0xff]  ;;  %v6876_v56 = vld [vmem:[#allocation21_spill] sm:$0xff] }
 0x1f8   : > { %v3236_v42 = vpop.f32.mrf.mxu1  ;;  %v2549_v23 = vadd.f32 %v6868_v4, %v6867_v7  ;;  %v2937_v63 = vadd.f32 %v6869_v29, %v2546_v18  ;;  %v6884_v4 = vld [vmem:[#allocation40_spill] sm:$0xff] }
 0x1f9   : > { %v3636_v14 = vpop.f32.mrf.mxu0  ;;  %3812 = vst [vmem:[%s6481_s6 + $0x70] sm:$0xff] %v3780_v8  ;;  %v3783_v44 = vmax.f32 %v3751_v57, 0.0  ;;  %v3750_v32 = vadd.f32 %v6465_v54, %v3711_v33  ;;  %v3714_v60 = vadd.f32 %v4954_v36, %v3324_v52  ;;  %v3323_v59 = vadd.f32 %v3236_v42, %v2933_v17  ;;  %v6871_v36 = vld [vmem:[#allocation37_spill] sm:$0xff]  ;;  %v6879_v42 = vld [vmem:[#allocation22_spill] sm:$0xff] }
 0x1fa   : > { %v4907_v43 = vpop.f32.mrf.mxu1  ;;  %v2548_v47 = vadd.f32 %v6871_v36, %v6870_v37  ;;  %v2940_v20 = vadd.f32 %v6872_v9, %v2549_v23  ;;  %v6887_v37 = vld [vmem:[#allocation42_spill] sm:$0xff] }
 0x1fb   : > { %v4960_v31 = vpop.f32.mrf.mxu0  ;;  %3815 = vst [vmem:[%s6481_s6 + $0x88] sm:$0xff] %v3783_v44  ;;  %v3782_v22 = vmax.f32 %v3750_v32, 0.0  ;;  %v3753_v48 = vadd.f32 %v6465_v54, %v3714_v60  ;;  %v3713_v3 = vadd.f32 %v3626_v5, %v3323_v59  ;;  %v3326_v27 = vadd.f32 %v4907_v43, %v2936_v49  ;;  %v6874_v5 = vld [vmem:[#allocation39_spill] sm:$0xff] }
 0x1fc   : > { %v3246_v40 = vpop.f32.mrf.mxu1  ;;  %v2551_v50 = vadd.f32 %v6874_v5, %v6873_v39  ;;  %v2939_v53 = vadd.f32 %v6875_v6, %v2548_v47  ;;  %v6882_v43 = vld [vmem:[#allocation23_spill] sm:$0xff]  ;;  %v6888_v47 = vld [vmem:[#allocation25_spill] sm:$0xff]  ;;  %v6890_v39 = vld [vmem:[#allocation44_spill] sm:$0xff] }
 0x1fd   : > { %v3646_v26 = vpop.f32.mrf.mxu0  ;;  %3814 = vst [vmem:[%s6481_s6 + $0x80] sm:$0xff] %v3782_v22  ;;  %v3785_v16 = vmax.f32 %v3753_v48, 0.0  ;;  %v3752_v35 = vadd.f32 %v6465_v54, %v3713_v3  ;;  %v3716_v24 = vadd.f32 %v4957_v28, %v3326_v27  ;;  %v3325_v55 = vadd.f32 %v3246_v40, %v2935_v62  ;;  %v6877_v28 = vld [vmem:[#allocation41_spill] sm:$0xff]  ;;  %v6885_v40 = vld [vmem:[#allocation24_spill] sm:$0xff] }
 0x1fe   : > { %v4910_v38 = vpop.f32.mrf.mxu1  ;;  %v2550_v8 = vadd.f32 %v6877_v28, %v6876_v56  ;;  %v2942_v0 = vadd.f32 %v6878_v45, %v2551_v50 }
 0x1ff   : > { %v4963_v19 = vpop.f32.mrf.mxu0  ;;  %3817 = vst [vmem:[%s6481_s6 + $0x98] sm:$0xff] %v3785_v16  ;;  %v3784_v2 = vmax.f32 %v3752_v35, 0.0  ;;  %v3755_v12 = vadd.f32 %v6465_v54, %v3716_v24  ;;  %v3715_v15 = vadd.f32 %v3636_v14, %v3325_v55  ;;  %v3328_v1 = vadd.f32 %v4910_v38, %v2938_v21  ;;  %v6880_v14 = vld [vmem:[#allocation43_spill] sm:$0xff]  ;;  %v6889_v38 = vld [vmem:[#allocation48_spill] sm:$0xff] }
 0x200   : > { %v3256_v46 = vpop.f32.mrf.mxu1  ;;  %v2553_v44 = vadd.f32 %v6880_v14, %v6879_v42  ;;  %v2941_v18 = vadd.f32 %v6881_v11, %v2550_v8 }
 0x201   : > { %v3656_v30 = vpop.f32.mrf.mxu0  ;;  %3816 = vst [vmem:[%s6481_s6 + $0x90] sm:$0xff] %v3784_v2  ;;  %v3787_v41 = vmax.f32 %v3755_v12, 0.0  ;;  %v3754_v34 = vadd.f32 %v6465_v54, %v3715_v15  ;;  %v3718_v17 = vadd.f32 %v4960_v31, %v3328_v1  ;;  %v3327_v58 = vadd.f32 %v3256_v46, %v2937_v63  ;;  %v6883_v31 = vld [vmem:[#allocation45_spill] sm:$0xff] }
 0x202   : > { %v4913_v57 = vpop.f32.mrf.mxu1  ;;  %v2552_v22 = vadd.f32 %v6883_v31, %v6882_v43  ;;  %v2944_v23 = vadd.f32 %v6884_v4, %v2553_v44 }
 0x203   : > { %v4966_v33 = vpop.f32.mrf.mxu0  ;;  %3819 = vst [vmem:[%s6481_s6 + $0xa8] sm:$0xff] %v3787_v41  ;;  %v3786_v52 = vmax.f32 %v3754_v34, 0.0  ;;  %v3757_v13 = vadd.f32 %v6465_v54, %v3718_v17  ;;  %v3717_v49 = vadd.f32 %v3646_v26, %v3327_v58  ;;  %v3330_v61 = vadd.f32 %v4913_v57, %v2940_v20  ;;  %v6886_v26 = vld [vmem:[#allocation47_spill] sm:$0xff]  ;;  %v6891_v17 = vld [vmem:[#allocation46_spill] sm:$0xff] }
 0x204   : > { %v3266_v32 = vpop.f32.mrf.mxu1  ;;  %v2555_v16 = vadd.f32 %v6886_v26, %v6885_v40  ;;  %v2943_v36 = vadd.f32 %v6887_v37, %v2552_v22 }
 0x205   : > { %v3666_v60 = vpop.f32.mrf.mxu0  ;;  %3818 = vst [vmem:[%s6481_s6 + $0xa0] sm:$0xff] %v3786_v52  ;;  %v3789_v59 = vmax.f32 %v3757_v13, 0.0  ;;  %v3756_v51 = vadd.f32 %v6465_v54, %v3717_v49  ;;  %v3720_v62 = vadd.f32 %v4963_v19, %v3330_v61  ;;  %v3329_v10 = vadd.f32 %v3266_v32, %v2939_v53 }
 0x206   : > { %v4916_v48 = vpop.f32.mrf.mxu1  ;;  %v2554_v19 = vadd.f32 %v6889_v38, %v6888_v47  ;;  %v2946_v5 = vadd.f32 %v6890_v39, %v2555_v16 }
 0x207   : > { %v4969_v3 = vpop.f32.mrf.mxu0  ;;  %3821 = vst [vmem:[%s6481_s6 + $0xb8] sm:$0xff] %v3789_v59  ;;  %v3788_v27 = vmax.f32 %v3756_v51, 0.0  ;;  %v3759_v25 = vadd.f32 %v6465_v54, %v3720_v62  ;;  %v3719_v21 = vadd.f32 %v3656_v30, %v3329_v10  ;;  %v3332_v7 = vadd.f32 %v4916_v48, %v2942_v0 }
 0x208   : > { %v3276_v35 = vpop.f32.mrf.mxu1  ;;  %v2945_v58 = vadd.f32 %v6891_v17, %v2554_v19 }
 0x209   : > { %3820 = vst [vmem:[%s6481_s6 + $0xb0] sm:$0xff] %v3788_v27  ;;  %v3791_v24 = vmax.f32 %v3759_v25, 0.0  ;;  %v3758_v55 = vadd.f32 %v6465_v54, %v3719_v21  ;;  %v3722_v29 = vadd.f32 %v4966_v33, %v3332_v7  ;;  %v3331_v63 = vadd.f32 %v3276_v35, %v2941_v18  ;;  %v3676_v12 = vpop.f32.mrf.mxu0 }
 0x20a   : > { %v4919_v2 = vpop.f32.mrf.mxu1 }
 0x20b   : > { %3823 = vst [vmem:[%s6481_s6 + $0xc8] sm:$0xff] %v3791_v24  ;;  %v3790_v15 = vmax.f32 %v3758_v55, 0.0  ;;  %v3761_v1 = vadd.f32 %v6465_v54, %v3722_v29  ;;  %v3721_v9 = vadd.f32 %v3666_v60, %v3331_v63  ;;  %v3334_v20 = vadd.f32 %v4919_v2, %v2944_v23  ;;  %v4972_v53 = vpop.f32.mrf.mxu0 }
 0x20c   : > { %v3286_v50 = vpop.f32.mrf.mxu1 }
 0x20d   : > { %3822 = vst [vmem:[%s6481_s6 + $0xc0] sm:$0xff] %v3790_v15  ;;  %v3793_v46 = vmax.f32 %v3761_v1, 0.0  ;;  %v3760_v30 = vadd.f32 %v6465_v54, %v3721_v9  ;;  %v3724_v41 = vadd.f32 %v4969_v3, %v3334_v20  ;;  %v3333_v34 = vadd.f32 %v3286_v50, %v2943_v36  ;;  %v3686_v45 = vpop.f32.mrf.mxu0 }
 0x20e   : > { %v4922_v6 = vpop.f32.mrf.mxu1 }
 0x20f   : > { %3825 = vst [vmem:[%s6481_s6 + $0xd8] sm:$0xff] %v3793_v46  ;;  %v3792_v56 = vmax.f32 %v3760_v30, 0.0  ;;  %v3763_v28 = vadd.f32 %v6465_v54, %v3724_v41  ;;  %v3723_v8 = vadd.f32 %v3676_v12, %v3333_v34  ;;  %v3336_v57 = vadd.f32 %v4922_v6, %v2946_v5 }
 0x210   : > { %v3296_v33 = vpop.f32.mrf.mxu1 }
 0x211   : > { %3824 = vst [vmem:[%s6481_s6 + $0xd0] sm:$0xff] %v3792_v56  ;;  %v3795_v52 = vmax.f32 %v3763_v28, 0.0  ;;  %v3762_v13 = vadd.f32 %v6465_v54, %v3723_v8  ;;  %v3726_v49 = vadd.f32 %v4972_v53, %v3336_v57  ;;  %v3335_v61 = vadd.f32 %v3296_v33, %v2945_v58 }
 0x213   : > { %3827 = vst [vmem:[%s6481_s6 + $0xe8] sm:$0xff] %v3795_v52  ;;  %v3794_v0 = vmax.f32 %v3762_v13, 0.0  ;;  %v3765_v42 = vadd.f32 %v6465_v54, %v3726_v49  ;;  %v3725_v14 = vadd.f32 %v3686_v45, %v3335_v61 }
 0x215   : > { %3826 = vst [vmem:[%s6481_s6 + $0xe0] sm:$0xff] %v3794_v0  ;;  %v3797_v44 = vmax.f32 %v3765_v42, 0.0  ;;  %v3764_v32 = vadd.f32 %v6465_v54, %v3725_v14 }
 0x217   : > { %3829 = vst [vmem:[%s6481_s6 + $0xf8] sm:$0xff] %v3797_v44  ;;  %v3796_v60 = vmax.f32 %v3764_v32, 0.0 }
 0x219   : > { %3828 = vst [vmem:[%s6481_s6 + $0xf0] sm:$0xff] %v3796_v60 }
 0x21a   : > { %5030 = shalt.err (!%p5027_p3)
}
 0x21b   : > { %s5031_s25 = scalar_lea.hbm %s6622_s11, 4096  ;;  %s5035_s28 = scalar_lea.hbm %s6673_s3, 8192 }
 0x21c   : > { %p5032_p4 = scmp.ne.s32.totalorder %s6622_s11, %s5031_s25  ;;  %p5036_p9 = scmp.lt.s32.totalorder %s6622_s11, %s6673_s3 }
 0x21d   : > { %p5037_p10 = scmp.lt.s32.totalorder %s5035_s28, %s5031_s25 }
 0x21e   : > { %p5033_p7 = pnand %p5032_p4, %p5141_p5 }
 0x21f   : > { %p5038_p11 = por %p5037_p10, %p5036_p9 }
 0x220   : > { %p5034_p8 = pneg %p5033_p7 }
 0x222   : > { %p5039_p12 = pnand %p5038_p11, %p5034_p8 }
 0x224   : > { %5042 = shalt.err (!%p5039_p12)
}
 0x225   : > { %s5081_s4 = smov 128   ;;  %s5082_s5 = smov 8  }
 0x226   : > { %4975 = dma.vmem_to_hbm [thread:$0]  (%p5141_p5), %s6624_s8, 4096, %s6622_s11, %s6630_s16, %s5081_s4, %s5081_s4, %s5082_s5  }
 0x227 PF: > { %p4981_p13 = scmp.ge.s32.totalorder %s5077_s15, 2  ;;  %s3859_s6 = sand.u32 1, %s5065_s12  }
 0x228   : > { %s3860_s7 = scalar_lea.sflag [#allocation4], %s3859_s6 }
 0x229   : > { %p4978_p0 = pnand %p4981_p13, %p5145_p6 }
 0x22b   : > { %p4979_p1 = pneg %p4978_p0 }
 0x22d   : > { %5060 = dma.done.wait (%p4979_p1), %s3860_s7, 4096  }
 0x22e   : > { %5062 = vsyncadd (%p4979_p1), %s3860_s7, 4294963200  ;;  %p13_p2 = scmp.ge.s32.totalorder %s5128_s18, 4   ;;  %s6892_s12 = smov %s5069_s13 }
 0x22f   : > { %s6893_s13 = smov %s5073_s14  ;;  %s6894_s14 = smov %s5139_s21 }
 0x230   : > { %s6895_s15 = smov %s5128_s18  ;;  %15 = sbr.rel (!%p13_p2) target bundleno = 3 (0x3), region = 78 }
 0x235   :  { %3865 = vsyncpa [#allocation4], 1 }
 0x236   :  { %3867 = vsyncpa [#allocation4 + $0x1], 1 }

</bundles_post_ra>
